<compile_context>
chip_gen: v5e
topology: v5e:2x2
jax: 0.10.0
libtpu: 0.0.40
codegen_flags: <defaults>
</compile_context>

<pallas_src>
import functools

import jax
import jax.numpy as jnp
from jax.experimental import pallas as pl
from jax.experimental.pallas import tpu as pltpu


def _round_up(x, m):
    return (x + m - 1) // m * m


def _pad_gate_cols(w, h, hp):
    """Pad each of the 4 per-gate column blocks of a (..., 4*h) array to hp."""
    lead = w.shape[:-1]
    w4 = w.reshape(lead + (4, h))
    w4 = jnp.pad(w4, [(0, 0)] * len(lead) + [(0, 0), (0, hp - h)])
    return w4.reshape(lead + (4 * hp,))


def _lstm_recurrence_kernel(gin_ref, whh_ref, h_out_ref, h_sc, c_sc, *,
                            hp, tc, seq_len):
    """One grid step = one chunk of `tc` timesteps over the padded batch.

    gin_ref  : (tc, Bp, 4*hp) f32   precomputed x@W_ih^T + bias (this chunk)
    whh_ref  : (hp, 4*hp)     bf16  recurrent weight, VMEM-resident (1 buffer)
    h_out_ref: (Bp, hp)       f32   final hidden state (lane-dense output)
    h_sc/c_sc: (Bp, hp)       f32   recurrent state, persists across chunks
    """
    chunk = pl.program_id(0)

    @pl.when(chunk == 0)
    def _init():
        h_sc[...] = jnp.zeros_like(h_sc)
        c_sc[...] = jnp.zeros_like(c_sc)

    whh = whh_ref[...]  # hoist the resident-weight load out of the step loop

    def step(i, carry):
        h, c = carry
        # Only the sequential part is in here: bf16 MXU matmul, f32 accumulate.
        gates = (jnp.dot(h.astype(jnp.bfloat16), whh,
                         preferred_element_type=jnp.float32)
                 + gin_ref[i])
        # hp is a multiple of 128 -> each gate slice is vreg/lane aligned.
        i_g = jax.nn.sigmoid(gates[:, 0 * hp:1 * hp])
        f_g = jax.nn.sigmoid(gates[:, 1 * hp:2 * hp])
        g_g = jnp.tanh(gates[:, 2 * hp:3 * hp])
        o_g = jax.nn.sigmoid(gates[:, 3 * hp:4 * hp])
        c_new = f_g * c + i_g * g_g
        h_new = o_g * jnp.tanh(c_new)
        # Mask padded timesteps (T rounded up to a multiple of the chunk size).
        valid = (chunk * tc + i) < seq_len
        return jnp.where(valid, h_new, h), jnp.where(valid, c_new, c)

    h, c = jax.lax.fori_loop(0, tc, step, (h_sc[...], c_sc[...]),
                             unroll=min(tc, 8))
    h_sc[...] = h
    c_sc[...] = c
    h_out_ref[...] = h   # resident output block; the last chunk's write wins


def lstm_forward(x_tokens, params, *, time_chunk=128):
    """x_tokens: (B, T) int32 token ids.  Returns (1, B, 1) float32."""
    emb = params["emb"]          # (V, E)
    w_ih = params["w_ih"]        # (4H, E)
    w_hh = params["w_hh"]        # (4H, H)
    b_ih = params["b_ih"]        # (4H,)
    b_hh = params["b_hh"]        # (4H,)
    w_fc = params["w_fc"]        # (1, H)
    b_fc = params["b_fc"]        # (1,)

    B, T = x_tokens.shape
    E = emb.shape[1]
    H = w_hh.shape[1]

    Hp = _round_up(H, 128)           # lane-aligned gates / lane-dense output
    Bp = _round_up(max(B, 8), 8)     # sublane-aligned batch
    Tc = min(time_chunk, T)          # timesteps per grid step
    Tp = _round_up(T, Tc)

    # ---- time-parallel input projection, hoisted out of the recurrence ----
    # One big (T*B, E) x (E, 4*Hp) matmul: bf16 MXU inputs, f32 accumulation.
    x_emb = jnp.take(emb, x_tokens, axis=0)                # (B, T, E)
    x_tbe = jnp.transpose(x_emb, (1, 0, 2))                # (T, B, E)
    wih_t = _pad_gate_cols(jnp.transpose(w_ih), H, Hp).astype(jnp.bfloat16)
    bias = _pad_gate_cols((b_ih + b_hh).astype(jnp.float32), H, Hp)
    gates_in = jnp.einsum("tbe,eg->tbg",
                          x_tbe.astype(jnp.bfloat16), wih_t,
                          preferred_element_type=jnp.float32) + bias
    gates_in = jnp.pad(gates_in, ((0, Tp - T), (0, Bp - B), (0, 0)))  # f32

    # Recurrent weight: (H,4H) -> padded (Hp,4Hp), bf16, single VMEM buffer.
    whh_t = _pad_gate_cols(jnp.transpose(w_hh), H, Hp)      # (H, 4Hp)
    whh_t = jnp.pad(whh_t, ((0, Hp - H), (0, 0))).astype(jnp.bfloat16)

    kernel = functools.partial(_lstm_recurrence_kernel,
                               hp=Hp, tc=Tc, seq_len=T)

    # Explicit VMEM budget: pipelined gates_in (2 buffers) + resident bf16
    # W_hh^T + state/output, with headroom; clamped to fit all generations.
    vmem_bytes = (2 * Tc * Bp * 4 * Hp * 4
                  + Hp * 4 * Hp * 2
                  + 6 * Bp * Hp * 4
                  + (2 << 20))
    vmem_limit = int(min(max(vmem_bytes, 32 << 20), 64 << 20))

    h_last = pl.pallas_call(
        kernel,
        out_shape=jax.ShapeDtypeStruct((Bp, Hp), jnp.float32),
        grid_spec=pltpu.PrefetchScalarGridSpec(
            num_scalar_prefetch=0,
            grid=(Tp // Tc,),
            in_specs=[
                # chunk of precomputed input-projection gates
                pl.BlockSpec((Tc, Bp, 4 * Hp), lambda c: (c, 0, 0)),
                # W_hh^T: whole array, VMEM-resident, single-buffered
                pl.BlockSpec(memory_space=pltpu.MemorySpace.VMEM),
            ],
            out_specs=pl.BlockSpec((Bp, Hp), lambda c: (0, 0)),
            scratch_shapes=[
                pltpu.VMEM((Bp, Hp), jnp.float32),   # h state
                pltpu.VMEM((Bp, Hp), jnp.float32),   # c state
            ],
        ),
        compiler_params=pltpu.CompilerParams(
            dimension_semantics=("arbitrary",),      # sequential recurrence
            vmem_limit_bytes=vmem_limit),
    )(gates_in, whh_t)

    # ---- final FC + sigmoid on the final hidden state, in plain JAX ----
    # (The N=1 FC inside the kernel would force masked lane stores; emitting
    #  the lane-dense hidden state is cheaper and the FC is negligible here.)
    h_final = h_last[:B, :H]                                   # (B, H)
    logits = jnp.dot(h_final, jnp.transpose(w_fc).astype(jnp.float32))
    logits = logits + b_fc.astype(jnp.float32)
    # TODO(synk): training-mode dropout masking not implemented (eval identity).
    # TODO(synk): on v7x with large B, shard the batch across the 2 TensorCores
    #             via a leading "parallel" grid axis; pointless at this toy B.
    # torch: fc(h) on h of shape (num_layers=1, B, H) -> (1, B, 1)
    return jax.nn.sigmoid(logits).reshape(1, B, 1)


def init_params(key, vocab_size, embedding_dim, lstm_size):
    kE, k1, k2, k3, k4, k5, k6 = jax.random.split(key, 7)
    H = lstm_size
    s = 1.0 / jnp.sqrt(H)
    return {
        "emb": jax.random.normal(kE, (vocab_size, embedding_dim), jnp.float32),
        "w_ih": jax.random.uniform(k1, (4 * H, embedding_dim), jnp.float32, -s, s),
        "w_hh": jax.random.uniform(k2, (4 * H, H), jnp.float32, -s, s),
        "b_ih": jax.random.uniform(k3, (4 * H,), jnp.float32, -s, s),
        "b_hh": jax.random.uniform(k4, (4 * H,), jnp.float32, -s, s),
        "w_fc": jax.random.uniform(k5, (1, H), jnp.float32, -s, s),
        "b_fc": jax.random.uniform(k6, (1,), jnp.float32, -s, s),
    }


if __name__ == "__main__":
    vocab_size = 50
    embedding_dim = 32
    lstm_size = 32
    batch, seq = 2, 8

    key = jax.random.PRNGKey(0)
    k_par, k_tok = jax.random.split(key)
    params = init_params(k_par, vocab_size, embedding_dim, lstm_size)
    tokens = jax.random.randint(k_tok, (batch, seq), 0, vocab_size, jnp.int32)

    y = lstm_forward(tokens, params)
    jax.block_until_ready(y)
    assert y.shape == (1, batch, 1) and y.dtype == jnp.float32
    print("KERNEL_OK")
</pallas_src>

<mosaic_0001>
module attributes {stable_mosaic.version = 11 : i64} {
  func.func @_lstm_recurrence_kernel(%arg0: i32, %arg1: memref<8x8x512xf32, #tpu.memory_space<vmem>>, %arg2: memref<128x512xbf16, #tpu.memory_space<vmem>>, %arg3: memref<8x128xf32, #tpu.memory_space<vmem>>, %arg4: memref<8x128xf32, #tpu.memory_space<vmem>>, %arg5: memref<8x128xf32, #tpu.memory_space<vmem>>) attributes {dimension_semantics = [#tpu.dimension_semantics<arbitrary>], iteration_bounds = array<i64: 1>, scalar_prefetch = 0 : i64, scratch_operands = 2 : i64, tpu.core_type = #tpu.core_type<tc>, window_params = [{transform_indices = @transform_0, window_bounds = array<i64: 8, 8, 512>}, {pipeline_mode = #tpu.pipeline_mode<synchronous>, transform_indices = @transform_1, window_bounds = array<i64: 128, 512>}, {pipeline_mode = #tpu.pipeline_mode<synchronous>, transform_indices = @transform_2, window_bounds = array<i64: 8, 128>}]} {
    %c0_i32 = arith.constant 0 : i32
    %0 = arith.cmpi eq, %arg0, %c0_i32 : i32
    %1 = arith.extui %0 : i1 to i32
    %c0_i32_0 = arith.constant 0 : i32
    %2 = arith.cmpi ne, %1, %c0_i32_0 : i32
    scf.if %2 {
      %cst_76 = arith.constant 0.000000e+00 : f32
      %297 = vector.broadcast %cst_76 : f32 to vector<8x128xf32>
      %c0_77 = arith.constant 0 : index
      %c0_78 = arith.constant 0 : index
      %298 = vector.load %arg4[%c0_77, %c0_78] : memref<8x128xf32, #tpu.memory_space<vmem>>, vector<8x128xf32>
      tpu.vector_store %arg4[%c0_77, %c0_78], %297 {strides = array<i32>} : memref<8x128xf32, #tpu.memory_space<vmem>>, vector<8x128xf32>,
      %cst_79 = arith.constant 0.000000e+00 : f32
      %299 = vector.broadcast %cst_79 : f32 to vector<8x128xf32>
      %c0_80 = arith.constant 0 : index
      %c0_81 = arith.constant 0 : index
      %300 = vector.load %arg5[%c0_80, %c0_81] : memref<8x128xf32, #tpu.memory_space<vmem>>, vector<8x128xf32>
      tpu.vector_store %arg5[%c0_80, %c0_81], %299 {strides = array<i32>} : memref<8x128xf32, #tpu.memory_space<vmem>>, vector<8x128xf32>,
    } else {
    }
    %c0 = arith.constant 0 : index
    %c0_1 = arith.constant 0 : index
    %3 = vector.load %arg2[%c0, %c0_1] : memref<128x512xbf16, #tpu.memory_space<vmem>>, vector<128x512xbf16>
    %c0_2 = arith.constant 0 : index
    %c0_3 = arith.constant 0 : index
    %4 = vector.load %arg4[%c0_2, %c0_3] : memref<8x128xf32, #tpu.memory_space<vmem>>, vector<8x128xf32>
    %c0_4 = arith.constant 0 : index
    %c0_5 = arith.constant 0 : index
    %5 = vector.load %arg5[%c0_4, %c0_5] : memref<8x128xf32, #tpu.memory_space<vmem>>, vector<8x128xf32>
    %c0_i32_6 = arith.constant 0 : i32
    %6 = arith.truncf %4 : vector<8x128xf32> to vector<8x128xbf16>
    %cst = arith.constant dense<0.000000e+00> : vector<8x512xf32>
    %7 = tpu.matmul %6, %3, %cst {dimension_numbers = #tpu.dot_dimension_numbers<[1], [0], [0], [1], [0, 0, 1, 1], [], []>} : vector<8x128xbf16>, vector<128x512xbf16>, vector<8x512xf32> -> vector<8x512xf32>
    %8 = arith.index_cast %c0_i32_6 : i32 to index
    %c0_7 = arith.constant 0 : index
    %c0_8 = arith.constant 0 : index
    %9 = vector.load %arg1[%8, %c0_7, %c0_8] : memref<8x8x512xf32, #tpu.memory_space<vmem>>, vector<1x8x512xf32>
    %10 = vector.shape_cast %9 : vector<1x8x512xf32> to vector<8x512xf32>
    %11 = arith.addf %7, %10 : vector<8x512xf32>
    %12 = vector.extract_strided_slice %11 {offsets = [0, 0], sizes = [8, 128], strides = [1, 1]} : vector<8x512xf32> to vector<8x128xf32>
    %13 = arith.negf %12 : vector<8x128xf32>
    %14 = math.exp %13 : vector<8x128xf32>
    %cst_9 = arith.constant 1.000000e+00 : f32
    %15 = vector.broadcast %cst_9 : f32 to vector<8x128xf32>
    %16 = arith.addf %15, %14 : vector<8x128xf32>
    %17 = arith.divf %15, %16 : vector<8x128xf32>
    %18 = vector.extract_strided_slice %11 {offsets = [0, 128], sizes = [8, 128], strides = [1, 1]} : vector<8x512xf32> to vector<8x128xf32>
    %19 = arith.negf %18 : vector<8x128xf32>
    %20 = math.exp %19 : vector<8x128xf32>
    %cst_10 = arith.constant 1.000000e+00 : f32
    %21 = vector.broadcast %cst_10 : f32 to vector<8x128xf32>
    %22 = arith.addf %21, %20 : vector<8x128xf32>
    %23 = arith.divf %21, %22 : vector<8x128xf32>
    %24 = vector.extract_strided_slice %11 {offsets = [0, 256], sizes = [8, 128], strides = [1, 1]} : vector<8x512xf32> to vector<8x128xf32>
    %25 = math.tanh %24 : vector<8x128xf32>
    %26 = vector.extract_strided_slice %11 {offsets = [0, 384], sizes = [8, 128], strides = [1, 1]} : vector<8x512xf32> to vector<8x128xf32>
    %27 = arith.negf %26 : vector<8x128xf32>
    %28 = math.exp %27 : vector<8x128xf32>
    %cst_11 = arith.constant 1.000000e+00 : f32
    %29 = vector.broadcast %cst_11 : f32 to vector<8x128xf32>
    %30 = arith.addf %29, %28 : vector<8x128xf32>
    %31 = arith.divf %29, %30 : vector<8x128xf32>
    %32 = arith.mulf %23, %5 : vector<8x128xf32>
    %33 = arith.mulf %17, %25 : vector<8x128xf32>
    %34 = arith.addf %32, %33 : vector<8x128xf32>
    %35 = math.tanh %34 : vector<8x128xf32>
    %36 = arith.mulf %31, %35 : vector<8x128xf32>
    %c8_i32 = arith.constant 8 : i32
    %37 = arith.muli %arg0, %c8_i32 : i32
    %38 = arith.addi %37, %c0_i32_6 : i32
    %c8_i32_12 = arith.constant 8 : i32
    %39 = arith.cmpi slt, %38, %c8_i32_12 : i32
    %40 = arith.select %39, %36, %4 : vector<8x128xf32>
    %41 = arith.select %39, %34, %5 : vector<8x128xf32>
    %c1_i32 = arith.constant 1 : i32
    %42 = arith.truncf %40 : vector<8x128xf32> to vector<8x128xbf16>
    %cst_13 = arith.constant dense<0.000000e+00> : vector<8x512xf32>
    %43 = tpu.matmul %42, %3, %cst_13 {dimension_numbers = #tpu.dot_dimension_numbers<[1], [0], [0], [1], [0, 0, 1, 1], [], []>} : vector<8x128xbf16>, vector<128x512xbf16>, vector<8x512xf32> -> vector<8x512xf32>
    %44 = arith.index_cast %c1_i32 : i32 to index
    %c0_14 = arith.constant 0 : index
    %c0_15 = arith.constant 0 : index
    %45 = vector.load %arg1[%44, %c0_14, %c0_15] : memref<8x8x512xf32, #tpu.memory_space<vmem>>, vector<1x8x512xf32>
    %46 = vector.shape_cast %45 : vector<1x8x512xf32> to vector<8x512xf32>
    %47 = arith.addf %43, %46 : vector<8x512xf32>
    %48 = vector.extract_strided_slice %47 {offsets = [0, 0], sizes = [8, 128], strides = [1, 1]} : vector<8x512xf32> to vector<8x128xf32>
    %49 = arith.negf %48 : vector<8x128xf32>
    %50 = math.exp %49 : vector<8x128xf32>
    %cst_16 = arith.constant 1.000000e+00 : f32
    %51 = vector.broadcast %cst_16 : f32 to vector<8x128xf32>
    %52 = arith.addf %51, %50 : vector<8x128xf32>
    %53 = arith.divf %51, %52 : vector<8x128xf32>
    %54 = vector.extract_strided_slice %47 {offsets = [0, 128], sizes = [8, 128], strides = [1, 1]} : vector<8x512xf32> to vector<8x128xf32>
    %55 = arith.negf %54 : vector<8x128xf32>
    %56 = math.exp %55 : vector<8x128xf32>
    %cst_17 = arith.constant 1.000000e+00 : f32
    %57 = vector.broadcast %cst_17 : f32 to vector<8x128xf32>
    %58 = arith.addf %57, %56 : vector<8x128xf32>
    %59 = arith.divf %57, %58 : vector<8x128xf32>
    %60 = vector.extract_strided_slice %47 {offsets = [0, 256], sizes = [8, 128], strides = [1, 1]} : vector<8x512xf32> to vector<8x128xf32>
    %61 = math.tanh %60 : vector<8x128xf32>
    %62 = vector.extract_strided_slice %47 {offsets = [0, 384], sizes = [8, 128], strides = [1, 1]} : vector<8x512xf32> to vector<8x128xf32>
    %63 = arith.negf %62 : vector<8x128xf32>
    %64 = math.exp %63 : vector<8x128xf32>
    %cst_18 = arith.constant 1.000000e+00 : f32
    %65 = vector.broadcast %cst_18 : f32 to vector<8x128xf32>
    %66 = arith.addf %65, %64 : vector<8x128xf32>
    %67 = arith.divf %65, %66 : vector<8x128xf32>
    %68 = arith.mulf %59, %41 : vector<8x128xf32>
    %69 = arith.mulf %53, %61 : vector<8x128xf32>
    %70 = arith.addf %68, %69 : vector<8x128xf32>
    %71 = math.tanh %70 : vector<8x128xf32>
    %72 = arith.mulf %67, %71 : vector<8x128xf32>
    %c8_i32_19 = arith.constant 8 : i32
    %73 = arith.muli %arg0, %c8_i32_19 : i32
    %74 = arith.addi %73, %c1_i32 : i32
    %c8_i32_20 = arith.constant 8 : i32
    %75 = arith.cmpi slt, %74, %c8_i32_20 : i32
    %76 = arith.select %75, %72, %40 : vector<8x128xf32>
    %77 = arith.select %75, %70, %41 : vector<8x128xf32>
    %c2_i32 = arith.constant 2 : i32
    %78 = arith.truncf %76 : vector<8x128xf32> to vector<8x128xbf16>
    %cst_21 = arith.constant dense<0.000000e+00> : vector<8x512xf32>
    %79 = tpu.matmul %78, %3, %cst_21 {dimension_numbers = #tpu.dot_dimension_numbers<[1], [0], [0], [1], [0, 0, 1, 1], [], []>} : vector<8x128xbf16>, vector<128x512xbf16>, vector<8x512xf32> -> vector<8x512xf32>
    %80 = arith.index_cast %c2_i32 : i32 to index
    %c0_22 = arith.constant 0 : index
    %c0_23 = arith.constant 0 : index
    %81 = vector.load %arg1[%80, %c0_22, %c0_23] : memref<8x8x512xf32, #tpu.memory_space<vmem>>, vector<1x8x512xf32>
    %82 = vector.shape_cast %81 : vector<1x8x512xf32> to vector<8x512xf32>
    %83 = arith.addf %79, %82 : vector<8x512xf32>
    %84 = vector.extract_strided_slice %83 {offsets = [0, 0], sizes = [8, 128], strides = [1, 1]} : vector<8x512xf32> to vector<8x128xf32>
    %85 = arith.negf %84 : vector<8x128xf32>
    %86 = math.exp %85 : vector<8x128xf32>
    %cst_24 = arith.constant 1.000000e+00 : f32
    %87 = vector.broadcast %cst_24 : f32 to vector<8x128xf32>
    %88 = arith.addf %87, %86 : vector<8x128xf32>
    %89 = arith.divf %87, %88 : vector<8x128xf32>
    %90 = vector.extract_strided_slice %83 {offsets = [0, 128], sizes = [8, 128], strides = [1, 1]} : vector<8x512xf32> to vector<8x128xf32>
    %91 = arith.negf %90 : vector<8x128xf32>
    %92 = math.exp %91 : vector<8x128xf32>
    %cst_25 = arith.constant 1.000000e+00 : f32
    %93 = vector.broadcast %cst_25 : f32 to vector<8x128xf32>
    %94 = arith.addf %93, %92 : vector<8x128xf32>
    %95 = arith.divf %93, %94 : vector<8x128xf32>
    %96 = vector.extract_strided_slice %83 {offsets = [0, 256], sizes = [8, 128], strides = [1, 1]} : vector<8x512xf32> to vector<8x128xf32>
    %97 = math.tanh %96 : vector<8x128xf32>
    %98 = vector.extract_strided_slice %83 {offsets = [0, 384], sizes = [8, 128], strides = [1, 1]} : vector<8x512xf32> to vector<8x128xf32>
    %99 = arith.negf %98 : vector<8x128xf32>
    %100 = math.exp %99 : vector<8x128xf32>
    %cst_26 = arith.constant 1.000000e+00 : f32
    %101 = vector.broadcast %cst_26 : f32 to vector<8x128xf32>
    %102 = arith.addf %101, %100 : vector<8x128xf32>
    %103 = arith.divf %101, %102 : vector<8x128xf32>
    %104 = arith.mulf %95, %77 : vector<8x128xf32>
    %105 = arith.mulf %89, %97 : vector<8x128xf32>
    %106 = arith.addf %104, %105 : vector<8x128xf32>
    %107 = math.tanh %106 : vector<8x128xf32>
    %108 = arith.mulf %103, %107 : vector<8x128xf32>
    %c8_i32_27 = arith.constant 8 : i32
    %109 = arith.muli %arg0, %c8_i32_27 : i32
    %110 = arith.addi %109, %c2_i32 : i32
    %c8_i32_28 = arith.constant 8 : i32
    %111 = arith.cmpi slt, %110, %c8_i32_28 : i32
    %112 = arith.select %111, %108, %76 : vector<8x128xf32>
    %113 = arith.select %111, %106, %77 : vector<8x128xf32>
    %c3_i32 = arith.constant 3 : i32
    %114 = arith.truncf %112 : vector<8x128xf32> to vector<8x128xbf16>
    %cst_29 = arith.constant dense<0.000000e+00> : vector<8x512xf32>
    %115 = tpu.matmul %114, %3, %cst_29 {dimension_numbers = #tpu.dot_dimension_numbers<[1], [0], [0], [1], [0, 0, 1, 1], [], []>} : vector<8x128xbf16>, vector<128x512xbf16>, vector<8x512xf32> -> vector<8x512xf32>
    %116 = arith.index_cast %c3_i32 : i32 to index
    %c0_30 = arith.constant 0 : index
    %c0_31 = arith.constant 0 : index
    %117 = vector.load %arg1[%116, %c0_30, %c0_31] : memref<8x8x512xf32, #tpu.memory_space<vmem>>, vector<1x8x512xf32>
    %118 = vector.shape_cast %117 : vector<1x8x512xf32> to vector<8x512xf32>
    %119 = arith.addf %115, %118 : vector<8x512xf32>
    %120 = vector.extract_strided_slice %119 {offsets = [0, 0], sizes = [8, 128], strides = [1, 1]} : vector<8x512xf32> to vector<8x128xf32>
    %121 = arith.negf %120 : vector<8x128xf32>
    %122 = math.exp %121 : vector<8x128xf32>
    %cst_32 = arith.constant 1.000000e+00 : f32
    %123 = vector.broadcast %cst_32 : f32 to vector<8x128xf32>
    %124 = arith.addf %123, %122 : vector<8x128xf32>
    %125 = arith.divf %123, %124 : vector<8x128xf32>
    %126 = vector.extract_strided_slice %119 {offsets = [0, 128], sizes = [8, 128], strides = [1, 1]} : vector<8x512xf32> to vector<8x128xf32>
    %127 = arith.negf %126 : vector<8x128xf32>
    %128 = math.exp %127 : vector<8x128xf32>
    %cst_33 = arith.constant 1.000000e+00 : f32
    %129 = vector.broadcast %cst_33 : f32 to vector<8x128xf32>
    %130 = arith.addf %129, %128 : vector<8x128xf32>
    %131 = arith.divf %129, %130 : vector<8x128xf32>
    %132 = vector.extract_strided_slice %119 {offsets = [0, 256], sizes = [8, 128], strides = [1, 1]} : vector<8x512xf32> to vector<8x128xf32>
    %133 = math.tanh %132 : vector<8x128xf32>
    %134 = vector.extract_strided_slice %119 {offsets = [0, 384], sizes = [8, 128], strides = [1, 1]} : vector<8x512xf32> to vector<8x128xf32>
    %135 = arith.negf %134 : vector<8x128xf32>
    %136 = math.exp %135 : vector<8x128xf32>
    %cst_34 = arith.constant 1.000000e+00 : f32
    %137 = vector.broadcast %cst_34 : f32 to vector<8x128xf32>
    %138 = arith.addf %137, %136 : vector<8x128xf32>
    %139 = arith.divf %137, %138 : vector<8x128xf32>
    %140 = arith.mulf %131, %113 : vector<8x128xf32>
    %141 = arith.mulf %125, %133 : vector<8x128xf32>
    %142 = arith.addf %140, %141 : vector<8x128xf32>
    %143 = math.tanh %142 : vector<8x128xf32>
    %144 = arith.mulf %139, %143 : vector<8x128xf32>
    %c8_i32_35 = arith.constant 8 : i32
    %145 = arith.muli %arg0, %c8_i32_35 : i32
    %146 = arith.addi %145, %c3_i32 : i32
    %c8_i32_36 = arith.constant 8 : i32
    %147 = arith.cmpi slt, %146, %c8_i32_36 : i32
    %148 = arith.select %147, %144, %112 : vector<8x128xf32>
    %149 = arith.select %147, %142, %113 : vector<8x128xf32>
    %c4_i32 = arith.constant 4 : i32
    %150 = arith.truncf %148 : vector<8x128xf32> to vector<8x128xbf16>
    %cst_37 = arith.constant dense<0.000000e+00> : vector<8x512xf32>
    %151 = tpu.matmul %150, %3, %cst_37 {dimension_numbers = #tpu.dot_dimension_numbers<[1], [0], [0], [1], [0, 0, 1, 1], [], []>} : vector<8x128xbf16>, vector<128x512xbf16>, vector<8x512xf32> -> vector<8x512xf32>
    %152 = arith.index_cast %c4_i32 : i32 to index
    %c0_38 = arith.constant 0 : index
    %c0_39 = arith.constant 0 : index
    %153 = vector.load %arg1[%152, %c0_38, %c0_39] : memref<8x8x512xf32, #tpu.memory_space<vmem>>, vector<1x8x512xf32>
    %154 = vector.shape_cast %153 : vector<1x8x512xf32> to vector<8x512xf32>
    %155 = arith.addf %151, %154 : vector<8x512xf32>
    %156 = vector.extract_strided_slice %155 {offsets = [0, 0], sizes = [8, 128], strides = [1, 1]} : vector<8x512xf32> to vector<8x128xf32>
    %157 = arith.negf %156 : vector<8x128xf32>
    %158 = math.exp %157 : vector<8x128xf32>
    %cst_40 = arith.constant 1.000000e+00 : f32
    %159 = vector.broadcast %cst_40 : f32 to vector<8x128xf32>
    %160 = arith.addf %159, %158 : vector<8x128xf32>
    %161 = arith.divf %159, %160 : vector<8x128xf32>
    %162 = vector.extract_strided_slice %155 {offsets = [0, 128], sizes = [8, 128], strides = [1, 1]} : vector<8x512xf32> to vector<8x128xf32>
    %163 = arith.negf %162 : vector<8x128xf32>
    %164 = math.exp %163 : vector<8x128xf32>
    %cst_41 = arith.constant 1.000000e+00 : f32
    %165 = vector.broadcast %cst_41 : f32 to vector<8x128xf32>
    %166 = arith.addf %165, %164 : vector<8x128xf32>
    %167 = arith.divf %165, %166 : vector<8x128xf32>
    %168 = vector.extract_strided_slice %155 {offsets = [0, 256], sizes = [8, 128], strides = [1, 1]} : vector<8x512xf32> to vector<8x128xf32>
    %169 = math.tanh %168 : vector<8x128xf32>
    %170 = vector.extract_strided_slice %155 {offsets = [0, 384], sizes = [8, 128], strides = [1, 1]} : vector<8x512xf32> to vector<8x128xf32>
    %171 = arith.negf %170 : vector<8x128xf32>
    %172 = math.exp %171 : vector<8x128xf32>
    %cst_42 = arith.constant 1.000000e+00 : f32
    %173 = vector.broadcast %cst_42 : f32 to vector<8x128xf32>
    %174 = arith.addf %173, %172 : vector<8x128xf32>
    %175 = arith.divf %173, %174 : vector<8x128xf32>
    %176 = arith.mulf %167, %149 : vector<8x128xf32>
    %177 = arith.mulf %161, %169 : vector<8x128xf32>
    %178 = arith.addf %176, %177 : vector<8x128xf32>
    %179 = math.tanh %178 : vector<8x128xf32>
    %180 = arith.mulf %175, %179 : vector<8x128xf32>
    %c8_i32_43 = arith.constant 8 : i32
    %181 = arith.muli %arg0, %c8_i32_43 : i32
    %182 = arith.addi %181, %c4_i32 : i32
    %c8_i32_44 = arith.constant 8 : i32
    %183 = arith.cmpi slt, %182, %c8_i32_44 : i32
    %184 = arith.select %183, %180, %148 : vector<8x128xf32>
    %185 = arith.select %183, %178, %149 : vector<8x128xf32>
    %c5_i32 = arith.constant 5 : i32
    %186 = arith.truncf %184 : vector<8x128xf32> to vector<8x128xbf16>
    %cst_45 = arith.constant dense<0.000000e+00> : vector<8x512xf32>
    %187 = tpu.matmul %186, %3, %cst_45 {dimension_numbers = #tpu.dot_dimension_numbers<[1], [0], [0], [1], [0, 0, 1, 1], [], []>} : vector<8x128xbf16>, vector<128x512xbf16>, vector<8x512xf32> -> vector<8x512xf32>
    %188 = arith.index_cast %c5_i32 : i32 to index
    %c0_46 = arith.constant 0 : index
    %c0_47 = arith.constant 0 : index
    %189 = vector.load %arg1[%188, %c0_46, %c0_47] : memref<8x8x512xf32, #tpu.memory_space<vmem>>, vector<1x8x512xf32>
    %190 = vector.shape_cast %189 : vector<1x8x512xf32> to vector<8x512xf32>
    %191 = arith.addf %187, %190 : vector<8x512xf32>
    %192 = vector.extract_strided_slice %191 {offsets = [0, 0], sizes = [8, 128], strides = [1, 1]} : vector<8x512xf32> to vector<8x128xf32>
    %193 = arith.negf %192 : vector<8x128xf32>
    %194 = math.exp %193 : vector<8x128xf32>
    %cst_48 = arith.constant 1.000000e+00 : f32
    %195 = vector.broadcast %cst_48 : f32 to vector<8x128xf32>
    %196 = arith.addf %195, %194 : vector<8x128xf32>
    %197 = arith.divf %195, %196 : vector<8x128xf32>
    %198 = vector.extract_strided_slice %191 {offsets = [0, 128], sizes = [8, 128], strides = [1, 1]} : vector<8x512xf32> to vector<8x128xf32>
    %199 = arith.negf %198 : vector<8x128xf32>
    %200 = math.exp %199 : vector<8x128xf32>
    %cst_49 = arith.constant 1.000000e+00 : f32
    %201 = vector.broadcast %cst_49 : f32 to vector<8x128xf32>
    %202 = arith.addf %201, %200 : vector<8x128xf32>
    %203 = arith.divf %201, %202 : vector<8x128xf32>
    %204 = vector.extract_strided_slice %191 {offsets = [0, 256], sizes = [8, 128], strides = [1, 1]} : vector<8x512xf32> to vector<8x128xf32>
    %205 = math.tanh %204 : vector<8x128xf32>
    %206 = vector.extract_strided_slice %191 {offsets = [0, 384], sizes = [8, 128], strides = [1, 1]} : vector<8x512xf32> to vector<8x128xf32>
    %207 = arith.negf %206 : vector<8x128xf32>
    %208 = math.exp %207 : vector<8x128xf32>
    %cst_50 = arith.constant 1.000000e+00 : f32
    %209 = vector.broadcast %cst_50 : f32 to vector<8x128xf32>
    %210 = arith.addf %209, %208 : vector<8x128xf32>
    %211 = arith.divf %209, %210 : vector<8x128xf32>
    %212 = arith.mulf %203, %185 : vector<8x128xf32>
    %213 = arith.mulf %197, %205 : vector<8x128xf32>
    %214 = arith.addf %212, %213 : vector<8x128xf32>
    %215 = math.tanh %214 : vector<8x128xf32>
    %216 = arith.mulf %211, %215 : vector<8x128xf32>
    %c8_i32_51 = arith.constant 8 : i32
    %217 = arith.muli %arg0, %c8_i32_51 : i32
    %218 = arith.addi %217, %c5_i32 : i32
    %c8_i32_52 = arith.constant 8 : i32
    %219 = arith.cmpi slt, %218, %c8_i32_52 : i32
    %220 = arith.select %219, %216, %184 : vector<8x128xf32>
    %221 = arith.select %219, %214, %185 : vector<8x128xf32>
    %c6_i32 = arith.constant 6 : i32
    %222 = arith.truncf %220 : vector<8x128xf32> to vector<8x128xbf16>
    %cst_53 = arith.constant dense<0.000000e+00> : vector<8x512xf32>
    %223 = tpu.matmul %222, %3, %cst_53 {dimension_numbers = #tpu.dot_dimension_numbers<[1], [0], [0], [1], [0, 0, 1, 1], [], []>} : vector<8x128xbf16>, vector<128x512xbf16>, vector<8x512xf32> -> vector<8x512xf32>
    %224 = arith.index_cast %c6_i32 : i32 to index
    %c0_54 = arith.constant 0 : index
    %c0_55 = arith.constant 0 : index
    %225 = vector.load %arg1[%224, %c0_54, %c0_55] : memref<8x8x512xf32, #tpu.memory_space<vmem>>, vector<1x8x512xf32>
    %226 = vector.shape_cast %225 : vector<1x8x512xf32> to vector<8x512xf32>
    %227 = arith.addf %223, %226 : vector<8x512xf32>
    %228 = vector.extract_strided_slice %227 {offsets = [0, 0], sizes = [8, 128], strides = [1, 1]} : vector<8x512xf32> to vector<8x128xf32>
    %229 = arith.negf %228 : vector<8x128xf32>
    %230 = math.exp %229 : vector<8x128xf32>
    %cst_56 = arith.constant 1.000000e+00 : f32
    %231 = vector.broadcast %cst_56 : f32 to vector<8x128xf32>
    %232 = arith.addf %231, %230 : vector<8x128xf32>
    %233 = arith.divf %231, %232 : vector<8x128xf32>
    %234 = vector.extract_strided_slice %227 {offsets = [0, 128], sizes = [8, 128], strides = [1, 1]} : vector<8x512xf32> to vector<8x128xf32>
    %235 = arith.negf %234 : vector<8x128xf32>
    %236 = math.exp %235 : vector<8x128xf32>
    %cst_57 = arith.constant 1.000000e+00 : f32
    %237 = vector.broadcast %cst_57 : f32 to vector<8x128xf32>
    %238 = arith.addf %237, %236 : vector<8x128xf32>
    %239 = arith.divf %237, %238 : vector<8x128xf32>
    %240 = vector.extract_strided_slice %227 {offsets = [0, 256], sizes = [8, 128], strides = [1, 1]} : vector<8x512xf32> to vector<8x128xf32>
    %241 = math.tanh %240 : vector<8x128xf32>
    %242 = vector.extract_strided_slice %227 {offsets = [0, 384], sizes = [8, 128], strides = [1, 1]} : vector<8x512xf32> to vector<8x128xf32>
    %243 = arith.negf %242 : vector<8x128xf32>
    %244 = math.exp %243 : vector<8x128xf32>
    %cst_58 = arith.constant 1.000000e+00 : f32
    %245 = vector.broadcast %cst_58 : f32 to vector<8x128xf32>
    %246 = arith.addf %245, %244 : vector<8x128xf32>
    %247 = arith.divf %245, %246 : vector<8x128xf32>
    %248 = arith.mulf %239, %221 : vector<8x128xf32>
    %249 = arith.mulf %233, %241 : vector<8x128xf32>
    %250 = arith.addf %248, %249 : vector<8x128xf32>
    %251 = math.tanh %250 : vector<8x128xf32>
    %252 = arith.mulf %247, %251 : vector<8x128xf32>
    %c8_i32_59 = arith.constant 8 : i32
    %253 = arith.muli %arg0, %c8_i32_59 : i32
    %254 = arith.addi %253, %c6_i32 : i32
    %c8_i32_60 = arith.constant 8 : i32
    %255 = arith.cmpi slt, %254, %c8_i32_60 : i32
    %256 = arith.select %255, %252, %220 : vector<8x128xf32>
    %257 = arith.select %255, %250, %221 : vector<8x128xf32>
    %c7_i32 = arith.constant 7 : i32
    %258 = arith.truncf %256 : vector<8x128xf32> to vector<8x128xbf16>
    %cst_61 = arith.constant dense<0.000000e+00> : vector<8x512xf32>
    %259 = tpu.matmul %258, %3, %cst_61 {dimension_numbers = #tpu.dot_dimension_numbers<[1], [0], [0], [1], [0, 0, 1, 1], [], []>} : vector<8x128xbf16>, vector<128x512xbf16>, vector<8x512xf32> -> vector<8x512xf32>
    %260 = arith.index_cast %c7_i32 : i32 to index
    %c0_62 = arith.constant 0 : index
    %c0_63 = arith.constant 0 : index
    %261 = vector.load %arg1[%260, %c0_62, %c0_63] : memref<8x8x512xf32, #tpu.memory_space<vmem>>, vector<1x8x512xf32>
    %262 = vector.shape_cast %261 : vector<1x8x512xf32> to vector<8x512xf32>
    %263 = arith.addf %259, %262 : vector<8x512xf32>
    %264 = vector.extract_strided_slice %263 {offsets = [0, 0], sizes = [8, 128], strides = [1, 1]} : vector<8x512xf32> to vector<8x128xf32>
    %265 = arith.negf %264 : vector<8x128xf32>
    %266 = math.exp %265 : vector<8x128xf32>
    %cst_64 = arith.constant 1.000000e+00 : f32
    %267 = vector.broadcast %cst_64 : f32 to vector<8x128xf32>
    %268 = arith.addf %267, %266 : vector<8x128xf32>
    %269 = arith.divf %267, %268 : vector<8x128xf32>
    %270 = vector.extract_strided_slice %263 {offsets = [0, 128], sizes = [8, 128], strides = [1, 1]} : vector<8x512xf32> to vector<8x128xf32>
    %271 = arith.negf %270 : vector<8x128xf32>
    %272 = math.exp %271 : vector<8x128xf32>
    %cst_65 = arith.constant 1.000000e+00 : f32
    %273 = vector.broadcast %cst_65 : f32 to vector<8x128xf32>
    %274 = arith.addf %273, %272 : vector<8x128xf32>
    %275 = arith.divf %273, %274 : vector<8x128xf32>
    %276 = vector.extract_strided_slice %263 {offsets = [0, 256], sizes = [8, 128], strides = [1, 1]} : vector<8x512xf32> to vector<8x128xf32>
    %277 = math.tanh %276 : vector<8x128xf32>
    %278 = vector.extract_strided_slice %263 {offsets = [0, 384], sizes = [8, 128], strides = [1, 1]} : vector<8x512xf32> to vector<8x128xf32>
    %279 = arith.negf %278 : vector<8x128xf32>
    %280 = math.exp %279 : vector<8x128xf32>
    %cst_66 = arith.constant 1.000000e+00 : f32
    %281 = vector.broadcast %cst_66 : f32 to vector<8x128xf32>
    %282 = arith.addf %281, %280 : vector<8x128xf32>
    %283 = arith.divf %281, %282 : vector<8x128xf32>
    %284 = arith.mulf %275, %257 : vector<8x128xf32>
    %285 = arith.mulf %269, %277 : vector<8x128xf32>
    %286 = arith.addf %284, %285 : vector<8x128xf32>
    %287 = math.tanh %286 : vector<8x128xf32>
    %288 = arith.mulf %283, %287 : vector<8x128xf32>
    %c8_i32_67 = arith.constant 8 : i32
    %289 = arith.muli %arg0, %c8_i32_67 : i32
    %290 = arith.addi %289, %c7_i32 : i32
    %c8_i32_68 = arith.constant 8 : i32
    %291 = arith.cmpi slt, %290, %c8_i32_68 : i32
    %292 = arith.select %291, %288, %256 : vector<8x128xf32>
    %293 = arith.select %291, %286, %257 : vector<8x128xf32>
    %c8_i32_69 = arith.constant 8 : i32
    %c0_70 = arith.constant 0 : index
    %c0_71 = arith.constant 0 : index
    %294 = vector.load %arg4[%c0_70, %c0_71] : memref<8x128xf32, #tpu.memory_space<vmem>>, vector<8x128xf32>
    tpu.vector_store %arg4[%c0_70, %c0_71], %292 {strides = array<i32>} : memref<8x128xf32, #tpu.memory_space<vmem>>, vector<8x128xf32>,
    %c0_72 = arith.constant 0 : index
    %c0_73 = arith.constant 0 : index
    %295 = vector.load %arg5[%c0_72, %c0_73] : memref<8x128xf32, #tpu.memory_space<vmem>>, vector<8x128xf32>
    tpu.vector_store %arg5[%c0_72, %c0_73], %293 {strides = array<i32>} : memref<8x128xf32, #tpu.memory_space<vmem>>, vector<8x128xf32>,
    %c0_74 = arith.constant 0 : index
    %c0_75 = arith.constant 0 : index
    %296 = vector.load %arg3[%c0_74, %c0_75] : memref<8x128xf32, #tpu.memory_space<vmem>>, vector<8x128xf32>
    tpu.vector_store %arg3[%c0_74, %c0_75], %292 {strides = array<i32>} : memref<8x128xf32, #tpu.memory_space<vmem>>, vector<8x128xf32>,
    return
  }
  func.func @transform_0(%arg0: i32) -> (i32, i32, i32) {
    %c0_i32 = arith.constant 0 : i32
    %c0_i32_0 = arith.constant 0 : i32
    %c0_i32_1 = arith.constant 0 : i32
    return %arg0, %c0_i32, %c0_i32_0 : i32, i32, i32
  }
  func.func @transform_1(%arg0: i32) -> (i32, i32) {
    %c0_i32 = arith.constant 0 : i32
    %c0_i32_0 = arith.constant 0 : i32
    %c0_i32_1 = arith.constant 0 : i32
    return %c0_i32, %c0_i32_0 : i32, i32
  }
  func.func @transform_2(%arg0: i32) -> (i32, i32) {
    %c0_i32 = arith.constant 0 : i32
    %c0_i32_0 = arith.constant 0 : i32
    %c0_i32_1 = arith.constant 0 : i32
    return %c0_i32, %c0_i32_0 : i32, i32
  }
}

</mosaic_0001>

<bundles_post_ra>
// kernel: tpu_custom_call.1
= control target key start
LH: loop header
LB: loop body
LE: loop exit
PB: predicated region body
PF: predicated region fallthrough
CT: control target
= control target key end

     0   :  { %7 = vsyncpa [#allocation5], 0  ;;  %s2066_s0 = inlined_call_operand.hbm [shape: f32[8,8,512], index: 0, kind: input, shape index: {}]   ;;  %s2067_s1 = inlined_call_operand.hbm [shape: bf16[128,512], index: 1, kind: input, shape index: {}]   ;;  %s2068_s2 = inlined_call_operand.hbm [shape: f32[8,128], index: 2, kind: output, shape index: {}]  }
   0x1   :  { %8 = vsyncpa [#allocation8], 0 }
   0x2   :  { %9 = vsyncpa [#allocation6], 0  ;;  %s14_s11 = sshll.u32 %s2066_s0, 4  ;;  %s1686_s12 = smov [#allocation4]   ;;  %s15_s11 = int_to_ptr.hbm [resolvable:$true] %s14_s11 }
   0x3   :  { %s16_s13 = sshll.u32 %s1686_s12, 4  ;;  %s27_s16 = sshll.u32 %s2067_s1, 4  ;;  %s17_s13 = int_to_ptr.vmem [resolvable:$true] %s16_s13  ;;  %s28_s16 = int_to_ptr.hbm [resolvable:$true] %s27_s16 }
   0x4   :  { %s1687_s17 = smov 512   ;;  %s1688_s18 = smov 32  }
   0x5   :  { %22 = dma.hbm_to_vmem [thread:$0]  %s15_s11, 4096, %s17_s13, [#allocation5], %s1687_s17, %s1687_s17, %s1688_s18  }
   0x6   :  { %s1689_s19 = smov [#allocation7]   ;;  %s1690_s21 = smov 256  }
   0x7   :  { %s29_s20 = sshll.u32 %s1689_s19, 4  ;;  %s1691_s22 = smov 16   ;;  %s30_s20 = int_to_ptr.vmem [resolvable:$true] %s29_s20 }
   0x8   :  { %35 = dma.hbm_to_vmem [thread:$0]  %s28_s16, 4096, %s30_s20, [#allocation8], %s1690_s21, %s1690_s21, %s1691_s22  }
   0x9   :  { %1680 = dma.done.wait [#allocation5], 4096  }
   0xa   :  { %1681 = vsyncadd [#allocation5], 4294963200 }
   0xb   :  { %1682 = dma.done.wait [#allocation8], 4096  }
   0xc   :  { %1683 = vsyncadd [#allocation8], 4294963200  ;;  %v1402_v0 = vld [vmem:[#allocation7 + $0xe0] sm:$0xf]  ;;  %v1470_v1 = vld [vmem:[#allocation7 + $0xec] sm:$0xf0] }
   0xd   :  { %v1468_v2 = vld [vmem:[#allocation7 + $0xe4] sm:$0xf]  ;;  %v1715_v3 = vor.u32 %v1470_v1, %v1402_v0  ;;  %v1404_v4 = vld [vmem:[#allocation7 + $0xf0] sm:$0xf0]  ;;  %v1469_v5 = vld [vmem:[#allocation7 + $0xec] sm:$0xf] }
   0xe   :  { %v1412_v6 = vld [vmem:[#allocation7 + $0xf8] sm:$0xf0]  ;;  %v1717_v7 = vor.u32 %v1468_v2, %v1404_v4  ;;  %v1386_v9 = vld [vmem:[#allocation7 + $0xc0] sm:$0xf]  ;;  %v1466_v10 = vld [vmem:[#allocation7 + $0xcc] sm:$0xf0] }
   0xf   :  { %v1719_v8 = vor.u32 %v1469_v5, %v1412_v6  ;;  %v1464_v11 = vld [vmem:[#allocation7 + $0xc4] sm:$0xf]  ;;  %249 = vmatpush.bf16.msra.mxu0 %v1715_v3  ;;  %v1722_v12 = vor.u32 %v1466_v10, %v1386_v9  ;;  %v1388_v13 = vld [vmem:[#allocation7 + $0xd0] sm:$0xf0]  ;;  %v1465_v14 = vld [vmem:[#allocation7 + $0xcc] sm:$0xf] }
  0x10   :  { %v1396_v15 = vld [vmem:[#allocation7 + $0xd8] sm:$0xf0]  ;;  %262 = vmatpush.bf16.msra.mxu1 %v1717_v7  ;;  %v1726_v16 = vor.u32 %v1464_v11, %v1388_v13  ;;  %v1410_v18 = vld [vmem:[#allocation7 + $0xe8] sm:$0xf]  ;;  %v1471_v19 = vld [vmem:[#allocation7 + $0xf4] sm:$0xf0] }
  0x11   :  { %288 = vmatpush.bf16.msra.mxu3 %v1719_v8  ;;  %v1728_v17 = vor.u32 %v1465_v14, %v1396_v15  ;;  %v1370_v20 = vld [vmem:[#allocation7 + $0xa0] sm:$0xf]  ;;  %v1730_v21 = vor.u32 %v1471_v19, %v1410_v18  ;;  %v1462_v22 = vld [vmem:[#allocation7 + $0xac] sm:$0xf0]  ;;  %v1460_v23 = vld [vmem:[#allocation7 + $0xa4] sm:$0xf] }
  0x12   :  { %v1372_v24 = vld [vmem:[#allocation7 + $0xb0] sm:$0xf0]  ;;  %v1461_v25 = vld [vmem:[#allocation7 + $0xac] sm:$0xf]  ;;  %v1380_v26 = vld [vmem:[#allocation7 + $0xb8] sm:$0xf0]  ;;  %v1734_v28 = vor.u32 %v1462_v22, %v1370_v20 }
  0x13   :  { %v1394_v27 = vld [vmem:[#allocation7 + $0xc8] sm:$0xf]  ;;  %250 = vmatpush.bf16.msra.mxu0 %v1722_v12  ;;  %275 = vmatpush.bf16.msra.mxu2 %v1730_v21  ;;  %v1467_v29 = vld [vmem:[#allocation7 + $0xd4] sm:$0xf0]  ;;  %v1354_v30 = vld [vmem:[#allocation7 + $0x80] sm:$0xf]  ;;  %v1738_v32 = vor.u32 %v1460_v23, %v1372_v24  ;;  %v1740_v33 = vor.u32 %v1461_v25, %v1380_v26 }
  0x14   :  { %v1458_v31 = vld [vmem:[#allocation7 + $0x8c] sm:$0xf0]  ;;  %263 = vmatpush.bf16.msra.mxu1 %v1726_v16  ;;  %v1742_v34 = vor.u32 %v1467_v29, %v1394_v27  ;;  %v1456_v35 = vld [vmem:[#allocation7 + $0x84] sm:$0xf]  ;;  %v1356_v36 = vld [vmem:[#allocation7 + $0x90] sm:$0xf0] }
  0x15   :  { %289 = vmatpush.bf16.msra.mxu3 %v1728_v17  ;;  %v1457_v37 = vld [vmem:[#allocation7 + $0x8c] sm:$0xf]  ;;  %v1364_v38 = vld [vmem:[#allocation7 + $0x98] sm:$0xf0]  ;;  %v1378_v39 = vld [vmem:[#allocation7 + $0xa8] sm:$0xf]  ;;  %v1746_v41 = vor.u32 %v1458_v31, %v1354_v30  ;;  %v1752_v45 = vor.u32 %v1456_v35, %v1356_v36 }
  0x16   :  { %v1463_v40 = vld [vmem:[#allocation7 + $0xb4] sm:$0xf0]  ;;  %v1338_v43 = vld [vmem:[#allocation7 + $0x60] sm:$0xf]  ;;  %v1454_v44 = vld [vmem:[#allocation7 + $0x6c] sm:$0xf0]  ;;  %v1754_v46 = vor.u32 %v1457_v37, %v1364_v38 }
  0x17   :  { %251 = vmatpush.bf16.msra.mxu0 %v1734_v28  ;;  %276 = vmatpush.bf16.msra.mxu2 %v1742_v34  ;;  %v1748_v42 = vor.u32 %v1463_v40, %v1378_v39  ;;  %v1452_v47 = vld [vmem:[#allocation7 + $0x64] sm:$0xf]  ;;  %v1362_v48 = vld [vmem:[#allocation7 + $0x88] sm:$0xf]  ;;  %v1459_v49 = vld [vmem:[#allocation7 + $0x94] sm:$0xf0]  ;;  %v1758_v53 = vor.u32 %v1454_v44, %v1338_v43 }
  0x18   :  { %264 = vmatpush.bf16.msra.mxu1 %v1738_v32  ;;  %v1340_v50 = vld [vmem:[#allocation7 + $0x70] sm:$0xf0]  ;;  %v1453_v51 = vld [vmem:[#allocation7 + $0x6c] sm:$0xf]  ;;  %v1348_v52 = vld [vmem:[#allocation7 + $0x78] sm:$0xf0]  ;;  %v1760_v54 = vor.u32 %v1459_v49, %v1362_v48 }
  0x19   :  { %290 = vmatpush.bf16.msra.mxu3 %v1740_v33  ;;  %v1322_v55 = vld [vmem:[#allocation7 + $0x40] sm:$0xf]  ;;  %v1450_v56 = vld [vmem:[#allocation7 + $0x4c] sm:$0xf0]  ;;  %v1764_v57 = vor.u32 %v1452_v47, %v1340_v50  ;;  %v1766_v58 = vor.u32 %v1453_v51, %v1348_v52  ;;  %v1448_v59 = vld [vmem:[#allocation7 + $0x44] sm:$0xf] }
  0x1a   :  { %v1346_v60 = vld [vmem:[#allocation7 + $0x68] sm:$0xf]  ;;  %v1455_v61 = vld [vmem:[#allocation7 + $0x74] sm:$0xf0]  ;;  %v1324_v62 = vld [vmem:[#allocation7 + $0x50] sm:$0xf0]  ;;  %v1770_v1 = vor.u32 %v1450_v56, %v1322_v55 }
  0x1b   :  { %252 = vmatpush.bf16.msra.mxu0 %v1746_v41  ;;  %277 = vmatpush.bf16.msra.mxu2 %v1748_v42  ;;  %v1449_v63 = vld [vmem:[#allocation7 + $0x4c] sm:$0xf]  ;;  %v1332_v0 = vld [vmem:[#allocation7 + $0x58] sm:$0xf0]  ;;  %v1772_v2 = vor.u32 %v1455_v61, %v1346_v60  ;;  %v1306_v4 = vld [vmem:[#allocation7 + $0x20] sm:$0xf]  ;;  %v1776_v6 = vor.u32 %v1448_v59, %v1324_v62 }
  0x1c   :  { %265 = vmatpush.bf16.msra.mxu1 %v1752_v45  ;;  %v1446_v5 = vld [vmem:[#allocation7 + $0x2c] sm:$0xf0]  ;;  %v1778_v9 = vor.u32 %v1449_v63, %v1332_v0  ;;  %v1444_v10 = vld [vmem:[#allocation7 + $0x24] sm:$0xf]  ;;  %v1330_v11 = vld [vmem:[#allocation7 + $0x48] sm:$0xf] }
  0x1d   :  { %291 = vmatpush.bf16.msra.mxu3 %v1754_v46  ;;  %v1451_v13 = vld [vmem:[#allocation7 + $0x54] sm:$0xf0]  ;;  %v1308_v14 = vld [vmem:[#allocation7 + $0x30] sm:$0xf0]  ;;  %v1445_v15 = vld [vmem:[#allocation7 + $0x2c] sm:$0xf]  ;;  %v1782_v19 = vor.u32 %v1446_v5, %v1306_v4 }
  0x1e   :  { %v1316_v18 = vld [vmem:[#allocation7 + $0x38] sm:$0xf0]  ;;  %v1784_v20 = vor.u32 %v1451_v13, %v1330_v11  ;;  %v1290_v22 = vld [vmem:[#allocation7] sm:$0xf]  ;;  %v1442_v23 = vld [vmem:[#allocation7 + $0xc] sm:$0xf0]  ;;  %v1788_v24 = vor.u32 %v1444_v10, %v1308_v14 }
  0x1f   :  { %253 = vmatpush.bf16.msra.mxu0 %v1758_v53  ;;  %278 = vmatpush.bf16.msra.mxu2 %v1760_v54  ;;  %v1790_v25 = vor.u32 %v1445_v15, %v1316_v18  ;;  %v1440_v26 = vld [vmem:[#allocation7 + $0x4] sm:$0xf]  ;;  %v1314_v27 = vld [vmem:[#allocation7 + $0x28] sm:$0xf]  ;;  %v1447_v29 = vld [vmem:[#allocation7 + $0x34] sm:$0xf0]  ;;  %v1794_v36 = vor.u32 %v1442_v23, %v1290_v22 }
  0x20   :  { %266 = vmatpush.bf16.msra.mxu1 %v1764_v57  ;;  %v1292_v30 = vld [vmem:[#allocation7 + $0x10] sm:$0xf0]  ;;  %v1441_v31 = vld [vmem:[#allocation7 + $0xc] sm:$0xf]  ;;  %v1300_v35 = vld [vmem:[#allocation7 + $0x18] sm:$0xf0]  ;;  %v1796_v37 = vor.u32 %v1447_v29, %v1314_v27 }
  0x21   :  { %292 = vmatpush.bf16.msra.mxu3 %v1766_v58  ;;  %v1800_v38 = vor.u32 %v1440_v26, %v1292_v30  ;;  %v1802_v39 = vor.u32 %v1441_v31, %v1300_v35  ;;  %v1298_v40 = vld [vmem:[#allocation7 + $0x8] sm:$0xf]  ;;  %v1443_v43 = vld [vmem:[#allocation7 + $0x14] sm:$0xf0]  ;;  %v1692_v47 = vmov 0.0|0.0   ;;  %v85_v48 = vld [vmem:[#allocation4] sm:$0xff] }
  0x22   :  { %v1808_v44 = vor.u32 %v1443_v43, %v1298_v40  ;;  %v86_v49 = vld [vmem:[#allocation4 + $0x8] sm:$0xff]  ;;  %v88_v60 = vld [vmem:[#allocation4 + $0x18] sm:$0xff]  ;;  %v87_v15 = vld [vmem:[#allocation4 + $0x10] sm:$0xff]  ;;  %s1693_s0 = smov [#allocation9]   ;;  %s1277_s25 = sshll.u32 %s2068_s2, 4  ;;  %s1278_s25 = int_to_ptr.hbm [resolvable:$true] %s1277_s25 }
  0x23   :  { %254 = vmatpush.bf16.msra.mxu0 %v1770_v1  ;;  %279 = vmatpush.bf16.msra.mxu2 %v1772_v2  ;;  %s1275_s1 = sshll.u32 %s1693_s0, 4  ;;  %s1276_s1 = int_to_ptr.vmem [resolvable:$true] %s1275_s1 }
  0x24   :  { %267 = vmatpush.bf16.msra.mxu1 %v1776_v6 }
  0x25   :  { %293 = vmatpush.bf16.msra.mxu3 %v1778_v9 }
  0x27   :  { %255 = vmatpush.bf16.msra.mxu0 %v1782_v19  ;;  %280 = vmatpush.bf16.msra.mxu2 %v1784_v20 }
  0x28   :  { %268 = vmatpush.bf16.msra.mxu1 %v1788_v24 }
  0x29   :  { %294 = vmatpush.bf16.msra.mxu3 %v1790_v25 }
  0x2b   :  { %256 = vmatpush.bf16.msra.mxu0 %v1794_v36  ;;  %281 = vmatpush.bf16.msra.mxu2 %v1796_v37 }
  0x2c   :  { %269 = vmatpush.bf16.msra.mxu1 %v1800_v38 }
  0x2d   :  { %295 = vmatpush.bf16.msra.mxu3 %v1802_v39 }
  0x2e   :  { %257 = vmatmul.bf16.vlgmr.msra.gmra.mxu0 %v1692_v47 }
  0x2f   :  { %377 = vmatpush.bf16.msrb.mxu0 %v1715_v3  ;;  %270 = vmatmul.bf16.vlgmr.msra.gmra.mxu1 %v1692_v47 }
  0x30   :  { %390 = vmatpush.bf16.msrb.mxu1 %v1717_v7  ;;  %296 = vmatmul.bf16.vlgmr.msra.gmra.mxu3 %v1692_v47 }
  0x31   :  { %416 = vmatpush.bf16.msrb.mxu3 %v1719_v8  ;;  %282 = vmatpush.bf16.msra.mxu2 %v1808_v44 }
  0x33   :  { %378 = vmatpush.bf16.msrb.mxu0 %v1722_v12 }
  0x34   :  { %391 = vmatpush.bf16.msrb.mxu1 %v1726_v16  ;;  %283 = vmatmul.bf16.vlgmr.msra.gmra.mxu2 %v1692_v47 }
  0x35   :  { %403 = vmatpush.bf16.msrb.mxu2 %v1730_v21  ;;  %417 = vmatpush.bf16.msrb.mxu3 %v1728_v17 }
  0x37   :  { %379 = vmatpush.bf16.msrb.mxu0 %v1734_v28 }
  0x38   :  { %392 = vmatpush.bf16.msrb.mxu1 %v1738_v32 }
  0x39   :  { %404 = vmatpush.bf16.msrb.mxu2 %v1742_v34  ;;  %418 = vmatpush.bf16.msrb.mxu3 %v1740_v33 }
  0x3b   :  { %380 = vmatpush.bf16.msrb.mxu0 %v1746_v41 }
  0x3c   :  { %393 = vmatpush.bf16.msrb.mxu1 %v1752_v45 }
  0x3d   :  { %405 = vmatpush.bf16.msrb.mxu2 %v1748_v42  ;;  %419 = vmatpush.bf16.msrb.mxu3 %v1754_v46 }
  0x3f   :  { %381 = vmatpush.bf16.msrb.mxu0 %v1758_v53 }
  0x40   :  { %394 = vmatpush.bf16.msrb.mxu1 %v1764_v57 }
  0x41   :  { %406 = vmatpush.bf16.msrb.mxu2 %v1760_v54  ;;  %420 = vmatpush.bf16.msrb.mxu3 %v1766_v58 }
  0x43   :  { %382 = vmatpush.bf16.msrb.mxu0 %v1770_v1 }
  0x44   :  { %395 = vmatpush.bf16.msrb.mxu1 %v1776_v6 }
  0x45   :  { %407 = vmatpush.bf16.msrb.mxu2 %v1772_v2  ;;  %421 = vmatpush.bf16.msrb.mxu3 %v1778_v9 }
  0x47   :  { %383 = vmatpush.bf16.msrb.mxu0 %v1782_v19 }
  0x48   :  { %396 = vmatpush.bf16.msrb.mxu1 %v1788_v24 }
  0x49   :  { %408 = vmatpush.bf16.msrb.mxu2 %v1784_v20  ;;  %422 = vmatpush.bf16.msrb.mxu3 %v1790_v25 }
  0x4b   :  { %384 = vmatpush.bf16.msrb.mxu0 %v1794_v36 }
  0x4c   :  { %397 = vmatpush.bf16.msrb.mxu1 %v1800_v38 }
  0x4d   :  { %409 = vmatpush.bf16.msrb.mxu2 %v1796_v37  ;;  %423 = vmatpush.bf16.msrb.mxu3 %v1802_v39 }
  0x4f   :  { %505 = vmatpush.bf16.msra.mxu0 %v1715_v3 }
  0x50   :  { %518 = vmatpush.bf16.msra.mxu1 %v1717_v7 }
  0x51   :  { %544 = vmatpush.bf16.msra.mxu3 %v1719_v8  ;;  %410 = vmatpush.bf16.msrb.mxu2 %v1808_v44 }
  0x53   :  { %506 = vmatpush.bf16.msra.mxu0 %v1722_v12 }
  0x54   :  { %519 = vmatpush.bf16.msra.mxu1 %v1726_v16 }
  0x55   :  { %531 = vmatpush.bf16.msra.mxu2 %v1730_v21  ;;  %545 = vmatpush.bf16.msra.mxu3 %v1728_v17 }
  0x57   :  { %507 = vmatpush.bf16.msra.mxu0 %v1734_v28 }
  0x58   :  { %520 = vmatpush.bf16.msra.mxu1 %v1738_v32 }
  0x59   :  { %532 = vmatpush.bf16.msra.mxu2 %v1742_v34  ;;  %546 = vmatpush.bf16.msra.mxu3 %v1740_v33 }
  0x5b   :  { %508 = vmatpush.bf16.msra.mxu0 %v1746_v41 }
  0x5c   :  { %521 = vmatpush.bf16.msra.mxu1 %v1752_v45 }
  0x5d   :  { %533 = vmatpush.bf16.msra.mxu2 %v1748_v42  ;;  %547 = vmatpush.bf16.msra.mxu3 %v1754_v46 }
  0x5f   :  { %509 = vmatpush.bf16.msra.mxu0 %v1758_v53 }
  0x60   :  { %522 = vmatpush.bf16.msra.mxu1 %v1764_v57 }
  0x61   :  { %534 = vmatpush.bf16.msra.mxu2 %v1760_v54  ;;  %548 = vmatpush.bf16.msra.mxu3 %v1766_v58 }
  0x63   :  { %510 = vmatpush.bf16.msra.mxu0 %v1770_v1 }
  0x64   :  { %523 = vmatpush.bf16.msra.mxu1 %v1776_v6 }
  0x65   :  { %535 = vmatpush.bf16.msra.mxu2 %v1772_v2  ;;  %549 = vmatpush.bf16.msra.mxu3 %v1778_v9 }
  0x67   :  { %511 = vmatpush.bf16.msra.mxu0 %v1782_v19 }
  0x68   :  { %524 = vmatpush.bf16.msra.mxu1 %v1788_v24 }
  0x69   :  { %536 = vmatpush.bf16.msra.mxu2 %v1784_v20  ;;  %550 = vmatpush.bf16.msra.mxu3 %v1790_v25 }
  0x6b   :  { %512 = vmatpush.bf16.msra.mxu0 %v1794_v36 }
  0x6c   :  { %525 = vmatpush.bf16.msra.mxu1 %v1800_v38 }
  0x6d   :  { %537 = vmatpush.bf16.msra.mxu2 %v1796_v37  ;;  %551 = vmatpush.bf16.msra.mxu3 %v1802_v39 }
  0x71   :  { %538 = vmatpush.bf16.msra.mxu2 %v1808_v44 }
  0xab   :  { %v258_v50 = vpop.f32.mrf.mxu0 }
  0xac   :  { %v259_v51 = vadd.f32 %v258_v50, %v85_v48  ;;  %v271_v52 = vpop.f32.mrf.mxu1 }
  0xad   :  { %v272_v55 = vadd.f32 %v271_v52, %v86_v49 }
  0xae   :  { %v1416_v56 = vmul.f32 -1.442695, %v259_v51 }
  0xaf   :  { %v1417_v59 = vmul.f32 -1.442695, %v272_v55 }
  0xb0   :  { %1480 = vpow2.f32 %v1416_v56 }
  0xb1   :  { %1482 = vpow2.f32 %v1417_v59 }
  0xb3   :  { %v297_v61 = vpop.f32.mrf.mxu3  ;;  %v260_v63 = vpop.f32.mrf.mxu0 }
  0xb4   :  { %v298_v62 = vadd.f32 %v297_v61, %v88_v60  ;;  %v273_v0 = vpop.f32.mrf.mxu1 }
  0xb6   :  { %v1418_v4 = vmul.f32 -1.442695, %v298_v62  ;;  %v1481_v5 = vpop.eup %1480 }
  0xb7   :  { %v284_v10 = vpop.f32.mrf.mxu2  ;;  %v1483_v11 = vpop.eup %1482  ;;  %v304_v13 = vadd.f32 1.0, %v1481_v5 }
  0xb8   :  { %1484 = vpow2.f32 %v1418_v4  ;;  %v323_v14 = vadd.f32 1.0, %v1483_v11  ;;  %v285_v23 = vadd.f32 %v284_v10, %v87_v15 }
  0xb9   :  { %1486 = vrcp.f32 %v304_v13  ;;  %v316_v47 = vand.u32 2147483648, %v304_v13  ;;  %v314_v50 = vand.u32 2147483647, %v304_v13  ;;  %vm310_vm2 = vweird.f32 %v304_v13 }
  0xba   :  { %1488 = vrcp.f32 %v323_v14  ;;  %v335_v48 = vand.u32 2147483648, %v323_v14  ;;  %v333_v52 = vand.u32 2147483647, %v323_v14  ;;  %vm329_vm3 = vweird.f32 %v323_v14 }
  0xbb   :  { %v299_v18 = vpop.f32.mrf.mxu3  ;;  %v317_v61 = vor.u32 1.1754944e-38, %v316_v47  ;;  %vm315_vm5 = vcmp.eq.f32.partialorder %v314_v50, 8.507059e+37  ;;  %v374_v47 = vld [vmem:[#allocation4 + $0x28] sm:$0xff] }
  0xbc   :  { %v336_v63 = vor.u32 1.1754944e-38, %v335_v48  ;;  %vm334_vm7 = vcmp.eq.f32.partialorder %v333_v52, 8.507059e+37 }
  0xbe   :  { %v1485_v22 = vpop.eup %1484 }
  0xbf   :  { %v343_v26 = vadd.f32 1.0, %v1485_v22  ;;  %v286_v27 = vpop.f32.mrf.mxu2  ;;  %v1487_v29 = vpop.eup %1486 }
  0xc0   :  { %v1489_v30 = vpop.eup %1488  ;;  %v306_v31 = vmul.f32 %v1487_v29, %v304_v13  ;;  %vm311_vm0 = vweird.f32 %v1487_v29 }
  0xc1   :  { %1490 = vrcp.f32 %v343_v26  ;;  %v325_v35 = vmul.f32 %v1489_v30, %v323_v14  ;;  %vm330_vm1 = vweird.f32 %v1489_v30  ;;  %vm312_vm4 = vmor %vm310_vm2, %vm311_vm0  ;;  %v355_v14 = vand.u32 2147483648, %v343_v26 }
  0xc2   :  { %1492 = vtanh.f32 %v285_v23  ;;  %v307_v40 = vsub.f32 1.0, %v306_v31  ;;  %vm331_vm6 = vmor %vm329_vm3, %vm330_vm1  ;;  %vm349_vm9 = vweird.f32 %v343_v26  ;;  %v353_v27 = vand.u32 2147483647, %v343_v26 }
  0xc3   :  { %v326_v43 = vsub.f32 1.0, %v325_v35  ;;  %v356_v31 = vor.u32 1.1754944e-38, %v355_v14 }
  0xc4   :  { %v308_v49 = vmul.f32 %v1487_v29, %v307_v40  ;;  %vm354_vm11 = vcmp.eq.f32.partialorder %v353_v27, 8.507059e+37 }
  0xc5   :  { %v327_v51 = vmul.f32 %v1489_v30, %v326_v43 }
  0xc6   :  { %v309_v56 = vadd.f32 %v1487_v29, %v308_v49 }
  0xc7   :  { %v1491_v55 = vpop.eup %1490  ;;  %v328_v62 = vadd.f32 %v1489_v30, %v327_v51 }
  0xc8   :  { %v1493_v59 = vpop.eup %1492  ;;  %v345_v60 = vmul.f32 %v1491_v55, %v343_v26  ;;  %v313_v0 = vsel %vm312_vm4, %v1487_v29, %v309_v56  ;;  %vm350_vm8 = vweird.f32 %v1491_v55  ;;  %v373_v26 = vld [vmem:[#allocation4 + $0x20] sm:$0xff]  ;;  %v376_v56 = vld [vmem:[#allocation4 + $0x38] sm:$0xff] }
  0xc9   :  { %v318_v5 = vsel %vm315_vm5, %v317_v61, %v313_v0  ;;  %v332_v10 = vsel %vm331_vm6, %v1489_v30, %v328_v62  ;;  %vm351_vm10 = vmor %vm349_vm9, %vm350_vm8 }
  0xca   :  { %v346_v4 = vsub.f32 1.0, %v345_v60  ;;  %v337_v11 = vsel %vm334_vm7, %v336_v63, %v332_v10  ;;  %v360_v15 = vmul.f32 %v1493_v59, %v318_v5 }
  0xcb   :  { %v359_v18 = vmul.f32 0.0, %v337_v11 }
  0xcc   :  { %v347_v22 = vmul.f32 %v1491_v55, %v346_v4 }
  0xcd   :  { %v1875_v23 = vadd.f32 %v360_v15, %v359_v18 }
  0xce   :  { %v348_v13 = vadd.f32 %v1491_v55, %v347_v22  ;;  %v375_v22 = vld [vmem:[#allocation4 + $0x30] sm:$0xff] }
  0xcf   :  { %1494 = vtanh.f32 %v1875_v23 }
  0xd0   :  { %v352_v29 = vsel %vm351_vm10, %v1491_v55, %v348_v13 }
  0xd1   :  { %v357_v30 = vsel %vm354_vm11, %v356_v31, %v352_v29 }
  0xd5   :  { %v1495_v35 = vpop.eup %1494 }
  0xd6   :  { %v363_v40 = vmul.f32 %v1495_v35, %v357_v30 }
  0xd8   :  { %v371_v43 = vpack.c.bf16 %v363_v40, %v363_v40 }
  0xda   :  { %385 = vmatmul.bf16.vlgmr.msrb.gmra.mxu0 %v371_v43  ;;  %398 = vmatmul.bf16.vlgmr.msrb.gmra.mxu1 %v371_v43 }
  0xdb   :  { %411 = vmatmul.bf16.vlgmr.msrb.gmra.mxu2 %v371_v43  ;;  %424 = vmatmul.bf16.vlgmr.msrb.gmra.mxu3 %v371_v43 }
  0xdc   :  { %633 = vmatpush.bf16.msrb.mxu0 %v1715_v3  ;;  %646 = vmatpush.bf16.msrb.mxu1 %v1717_v7 }
  0xdd   :  { %659 = vmatpush.bf16.msrb.mxu2 %v1730_v21  ;;  %672 = vmatpush.bf16.msrb.mxu3 %v1719_v8 }
  0xe0   :  { %634 = vmatpush.bf16.msrb.mxu0 %v1722_v12  ;;  %647 = vmatpush.bf16.msrb.mxu1 %v1726_v16 }
  0xe1   :  { %660 = vmatpush.bf16.msrb.mxu2 %v1742_v34  ;;  %673 = vmatpush.bf16.msrb.mxu3 %v1728_v17 }
  0xe4   :  { %635 = vmatpush.bf16.msrb.mxu0 %v1734_v28  ;;  %648 = vmatpush.bf16.msrb.mxu1 %v1738_v32 }
  0xe5   :  { %661 = vmatpush.bf16.msrb.mxu2 %v1748_v42  ;;  %674 = vmatpush.bf16.msrb.mxu3 %v1740_v33 }
  0xe8   :  { %636 = vmatpush.bf16.msrb.mxu0 %v1746_v41  ;;  %649 = vmatpush.bf16.msrb.mxu1 %v1752_v45 }
  0xe9   :  { %662 = vmatpush.bf16.msrb.mxu2 %v1760_v54  ;;  %675 = vmatpush.bf16.msrb.mxu3 %v1754_v46 }
  0xec   :  { %637 = vmatpush.bf16.msrb.mxu0 %v1758_v53  ;;  %650 = vmatpush.bf16.msrb.mxu1 %v1764_v57 }
  0xed   :  { %663 = vmatpush.bf16.msrb.mxu2 %v1772_v2  ;;  %676 = vmatpush.bf16.msrb.mxu3 %v1766_v58 }
  0xf0   :  { %638 = vmatpush.bf16.msrb.mxu0 %v1770_v1  ;;  %651 = vmatpush.bf16.msrb.mxu1 %v1776_v6 }
  0xf1   :  { %664 = vmatpush.bf16.msrb.mxu2 %v1784_v20  ;;  %677 = vmatpush.bf16.msrb.mxu3 %v1778_v9 }
  0xf4   :  { %639 = vmatpush.bf16.msrb.mxu0 %v1782_v19  ;;  %652 = vmatpush.bf16.msrb.mxu1 %v1788_v24 }
  0xf5   :  { %665 = vmatpush.bf16.msrb.mxu2 %v1796_v37  ;;  %678 = vmatpush.bf16.msrb.mxu3 %v1790_v25 }
  0xf8   :  { %640 = vmatpush.bf16.msrb.mxu0 %v1794_v36  ;;  %653 = vmatpush.bf16.msrb.mxu1 %v1800_v38 }
  0xf9   :  { %666 = vmatpush.bf16.msrb.mxu2 %v1808_v44  ;;  %679 = vmatpush.bf16.msrb.mxu3 %v1802_v39 }
 0x157   :  { %v386_v48 = vpop.f32.mrf.mxu0  ;;  %v399_v49 = vpop.f32.mrf.mxu1 }
 0x158   :  { %v387_v50 = vadd.f32 %v386_v48, %v373_v26  ;;  %v400_v51 = vadd.f32 %v399_v49, %v374_v47 }
 0x15a   :  { %v1419_v52 = vmul.f32 -1.442695, %v387_v50  ;;  %v1420_v55 = vmul.f32 -1.442695, %v400_v51 }
 0x15c   :  { %1496 = vpow2.f32 %v1419_v52 }
 0x15d   :  { %1498 = vpow2.f32 %v1420_v55 }
 0x15e   :  { %v412_v59 = vpop.f32.mrf.mxu2  ;;  %v425_v60 = vpop.f32.mrf.mxu3 }
 0x15f   :  { %v426_v61 = vadd.f32 %v425_v60, %v376_v56  ;;  %v388_v62 = vpop.f32.mrf.mxu0  ;;  %v401_v63 = vpop.f32.mrf.mxu1  ;;  %v413_v29 = vadd.f32 %v412_v59, %v375_v22 }
 0x161   :  { %v1421_v0 = vmul.f32 -1.442695, %v426_v61 }
 0x162   :  { %v1497_v4 = vpop.eup %1496 }
 0x163   :  { %v1499_v5 = vpop.eup %1498  ;;  %v432_v10 = vadd.f32 1.0, %v1497_v4  ;;  %1500 = vpow2.f32 %v1421_v0 }
 0x164   :  { %v451_v11 = vadd.f32 1.0, %v1499_v5 }
 0x165   :  { %1502 = vrcp.f32 %v432_v10  ;;  %v444_v26 = vand.u32 2147483648, %v432_v10  ;;  %v442_v49 = vand.u32 2147483647, %v432_v10  ;;  %vm438_vm14 = vweird.f32 %v432_v10 }
 0x166   :  { %1504 = vrcp.f32 %v451_v11  ;;  %v414_v15 = vpop.f32.mrf.mxu2  ;;  %v427_v18 = vpop.f32.mrf.mxu3  ;;  %v463_v47 = vand.u32 2147483648, %v451_v11  ;;  %v461_v51 = vand.u32 2147483647, %v451_v11  ;;  %vm457_vm15 = vweird.f32 %v451_v11 }
 0x167   :  { %v445_v56 = vor.u32 1.1754944e-38, %v444_v26  ;;  %vm443_vm2 = vcmp.eq.f32.partialorder %v442_v49, 8.507059e+37 }
 0x168   :  { %v464_v61 = vor.u32 1.1754944e-38, %v463_v47  ;;  %vm462_vm3 = vcmp.eq.f32.partialorder %v461_v51, 8.507059e+37 }
 0x169   :  { %v1501_v13 = vpop.eup %1500 }
 0x16a   :  { %v471_v14 = vadd.f32 1.0, %v1501_v13 }
 0x16b   :  { %v1503_v27 = vpop.eup %1502 }
 0x16c   :  { %v1505_v31 = vpop.eup %1504  ;;  %v434_v35 = vmul.f32 %v1503_v27, %v432_v10  ;;  %1506 = vrcp.f32 %v471_v14  ;;  %vm439_vm12 = vweird.f32 %v1503_v27  ;;  %vm477_vm5 = vweird.f32 %v471_v14 }
 0x16d   :  { %v453_v30 = vmul.f32 %v1505_v31, %v451_v11  ;;  %1508 = vtanh.f32 %v413_v29  ;;  %vm458_vm13 = vweird.f32 %v1505_v31  ;;  %vm440_vm0 = vmor %vm438_vm14, %vm439_vm12  ;;  %v483_v29 = vand.u32 2147483648, %v471_v14 }
 0x16e   :  { %v435_v40 = vsub.f32 1.0, %v434_v35  ;;  %vm459_vm1 = vmor %vm457_vm15, %vm458_vm13 }
 0x16f   :  { %v454_v43 = vsub.f32 1.0, %v453_v30  ;;  %v484_v30 = vor.u32 1.1754944e-38, %v483_v29 }
 0x170   :  { %v436_v48 = vmul.f32 %v1503_v27, %v435_v40 }
 0x171   :  { %v455_v50 = vmul.f32 %v1505_v31, %v454_v43 }
 0x172   :  { %v1507_v52 = vpop.eup %1506  ;;  %v437_v55 = vadd.f32 %v1503_v27, %v436_v48 }
 0x173   :  { %v456_v59 = vadd.f32 %v1505_v31, %v455_v50  ;;  %v473_v60 = vmul.f32 %v1507_v52, %v471_v14  ;;  %v1509_v63 = vpop.eup %1508  ;;  %vm478_vm4 = vweird.f32 %v1507_v52 }
 0x174   :  { %v441_v62 = vsel %vm440_vm0, %v1503_v27, %v437_v55  ;;  %v481_v27 = vand.u32 2147483647, %v471_v14  ;;  %vm479_vm6 = vmor %vm477_vm5, %vm478_vm4  ;;  %v502_v14 = vld [vmem:[#allocation4 + $0x48] sm:$0xff]  ;;  %v504_v55 = vld [vmem:[#allocation4 + $0x58] sm:$0xff] }
 0x175   :  { %v446_v0 = vsel %vm443_vm2, %v445_v56, %v441_v62  ;;  %v460_v4 = vsel %vm459_vm1, %v1505_v31, %v456_v59  ;;  %v474_v5 = vsub.f32 1.0, %v473_v60 }
 0x176   :  { %v465_v15 = vsel %vm462_vm3, %v464_v61, %v460_v4  ;;  %v488_v18 = vmul.f32 %v1509_v63, %v446_v0  ;;  %vm482_vm7 = vcmp.eq.f32.partialorder %v481_v27, 8.507059e+37 }
 0x177   :  { %v487_v22 = vmul.f32 %v465_v15, %v1875_v23  ;;  %v475_v13 = vmul.f32 %v1507_v52, %v474_v5  ;;  %v501_v23 = vld [vmem:[#allocation4 + $0x40] sm:$0xff] }
 0x179   :  { %v1911_v10 = vadd.f32 %v488_v18, %v487_v22  ;;  %v476_v11 = vadd.f32 %v1507_v52, %v475_v13  ;;  %v503_v13 = vld [vmem:[#allocation4 + $0x50] sm:$0xff] }
 0x17b   :  { %1510 = vtanh.f32 %v1911_v10  ;;  %v480_v35 = vsel %vm479_vm6, %v1507_v52, %v476_v11 }
 0x17c   :  { %v485_v40 = vsel %vm482_vm7, %v484_v30, %v480_v35 }
 0x181   :  { %v1511_v31 = vpop.eup %1510 }
 0x182   :  { %v491_v43 = vmul.f32 %v1511_v31, %v485_v40 }
 0x184   :  { %v499_v26 = vpack.c.bf16 %v491_v43, %v491_v43 }
 0x186   :  { %513 = vmatmul.bf16.vlgmr.msra.gmra.mxu0 %v499_v26  ;;  %526 = vmatmul.bf16.vlgmr.msra.gmra.mxu1 %v499_v26 }
 0x187   :  { %539 = vmatmul.bf16.vlgmr.msra.gmra.mxu2 %v499_v26  ;;  %552 = vmatmul.bf16.vlgmr.msra.gmra.mxu3 %v499_v26 }
 0x188   :  { %761 = vmatpush.bf16.msra.mxu0 %v1715_v3  ;;  %774 = vmatpush.bf16.msra.mxu1 %v1717_v7 }
 0x189   :  { %787 = vmatpush.bf16.msra.mxu2 %v1730_v21  ;;  %800 = vmatpush.bf16.msra.mxu3 %v1719_v8 }
 0x18c   :  { %762 = vmatpush.bf16.msra.mxu0 %v1722_v12  ;;  %775 = vmatpush.bf16.msra.mxu1 %v1726_v16 }
 0x18d   :  { %788 = vmatpush.bf16.msra.mxu2 %v1742_v34  ;;  %801 = vmatpush.bf16.msra.mxu3 %v1728_v17 }
 0x190   :  { %763 = vmatpush.bf16.msra.mxu0 %v1734_v28  ;;  %776 = vmatpush.bf16.msra.mxu1 %v1738_v32 }
 0x191   :  { %789 = vmatpush.bf16.msra.mxu2 %v1748_v42  ;;  %802 = vmatpush.bf16.msra.mxu3 %v1740_v33 }
 0x194   :  { %764 = vmatpush.bf16.msra.mxu0 %v1746_v41  ;;  %777 = vmatpush.bf16.msra.mxu1 %v1752_v45 }
 0x195   :  { %790 = vmatpush.bf16.msra.mxu2 %v1760_v54  ;;  %803 = vmatpush.bf16.msra.mxu3 %v1754_v46 }
 0x198   :  { %765 = vmatpush.bf16.msra.mxu0 %v1758_v53  ;;  %778 = vmatpush.bf16.msra.mxu1 %v1764_v57 }
 0x199   :  { %791 = vmatpush.bf16.msra.mxu2 %v1772_v2  ;;  %804 = vmatpush.bf16.msra.mxu3 %v1766_v58 }
 0x19c   :  { %766 = vmatpush.bf16.msra.mxu0 %v1770_v1  ;;  %779 = vmatpush.bf16.msra.mxu1 %v1776_v6 }
 0x19d   :  { %792 = vmatpush.bf16.msra.mxu2 %v1784_v20  ;;  %805 = vmatpush.bf16.msra.mxu3 %v1778_v9 }
 0x1a0   :  { %767 = vmatpush.bf16.msra.mxu0 %v1782_v19  ;;  %780 = vmatpush.bf16.msra.mxu1 %v1788_v24 }
 0x1a1   :  { %793 = vmatpush.bf16.msra.mxu2 %v1796_v37  ;;  %806 = vmatpush.bf16.msra.mxu3 %v1790_v25 }
 0x1a4   :  { %768 = vmatpush.bf16.msra.mxu0 %v1794_v36  ;;  %781 = vmatpush.bf16.msra.mxu1 %v1800_v38 }
 0x1a5   :  { %794 = vmatpush.bf16.msra.mxu2 %v1808_v44  ;;  %807 = vmatpush.bf16.msra.mxu3 %v1802_v39 }
 0x203   :  { %v514_v47 = vpop.f32.mrf.mxu0  ;;  %v527_v48 = vpop.f32.mrf.mxu1 }
 0x204   :  { %v515_v49 = vadd.f32 %v514_v47, %v501_v23  ;;  %v528_v50 = vadd.f32 %v527_v48, %v502_v14 }
 0x206   :  { %v1422_v51 = vmul.f32 -1.442695, %v515_v49  ;;  %v1423_v52 = vmul.f32 -1.442695, %v528_v50 }
 0x208   :  { %1512 = vpow2.f32 %v1422_v51 }
 0x209   :  { %1514 = vpow2.f32 %v1423_v52 }
 0x20a   :  { %v540_v56 = vpop.f32.mrf.mxu2  ;;  %v553_v59 = vpop.f32.mrf.mxu3 }
 0x20b   :  { %v554_v60 = vadd.f32 %v553_v59, %v504_v55  ;;  %v516_v61 = vpop.f32.mrf.mxu0  ;;  %v529_v62 = vpop.f32.mrf.mxu1  ;;  %v541_v35 = vadd.f32 %v540_v56, %v503_v13 }
 0x20d   :  { %v1424_v63 = vmul.f32 -1.442695, %v554_v60 }
 0x20e   :  { %v1513_v0 = vpop.eup %1512 }
 0x20f   :  { %v1515_v4 = vpop.eup %1514  ;;  %v560_v5 = vadd.f32 1.0, %v1513_v0  ;;  %1516 = vpow2.f32 %v1424_v63 }
 0x210   :  { %v579_v15 = vadd.f32 1.0, %v1515_v4 }
 0x211   :  { %1518 = vrcp.f32 %v560_v5  ;;  %v572_v23 = vand.u32 2147483648, %v560_v5  ;;  %v570_v48 = vand.u32 2147483647, %v560_v5  ;;  %vm566_vm10 = vweird.f32 %v560_v5 }
 0x212   :  { %1520 = vrcp.f32 %v579_v15  ;;  %v542_v18 = vpop.f32.mrf.mxu2  ;;  %v555_v22 = vpop.f32.mrf.mxu3  ;;  %v591_v14 = vand.u32 2147483648, %v579_v15  ;;  %v589_v50 = vand.u32 2147483647, %v579_v15  ;;  %vm585_vm11 = vweird.f32 %v579_v15 }
 0x213   :  { %v573_v55 = vor.u32 1.1754944e-38, %v572_v23  ;;  %vm571_vm14 = vcmp.eq.f32.partialorder %v570_v48, 8.507059e+37 }
 0x214   :  { %v592_v60 = vor.u32 1.1754944e-38, %v591_v14  ;;  %vm590_vm15 = vcmp.eq.f32.partialorder %v589_v50, 8.507059e+37 }
 0x215   :  { %v1517_v11 = vpop.eup %1516 }
 0x216   :  { %v599_v29 = vadd.f32 1.0, %v1517_v11 }
 0x217   :  { %v1519_v27 = vpop.eup %1518 }
 0x218   :  { %v1521_v30 = vpop.eup %1520  ;;  %v562_v31 = vmul.f32 %v1519_v27, %v560_v5  ;;  %1522 = vrcp.f32 %v599_v29  ;;  %vm567_vm8 = vweird.f32 %v1519_v27  ;;  %vm605_vm1 = vweird.f32 %v599_v29 }
 0x219   :  { %v581_v40 = vmul.f32 %v1521_v30, %v579_v15  ;;  %1524 = vtanh.f32 %v541_v35  ;;  %vm586_vm9 = vweird.f32 %v1521_v30  ;;  %vm568_vm12 = vmor %vm566_vm10, %vm567_vm8  ;;  %v611_v35 = vand.u32 2147483648, %v599_v29 }
 0x21a   :  { %v563_v43 = vsub.f32 1.0, %v562_v31  ;;  %vm587_vm13 = vmor %vm585_vm11, %vm586_vm9 }
 0x21b   :  { %v582_v26 = vsub.f32 1.0, %v581_v40  ;;  %v612_v40 = vor.u32 1.1754944e-38, %v611_v35 }
 0x21c   :  { %v564_v47 = vmul.f32 %v1519_v27, %v563_v43 }
 0x21d   :  { %v583_v49 = vmul.f32 %v1521_v30, %v582_v26 }
 0x21e   :  { %v1523_v51 = vpop.eup %1522  ;;  %v565_v52 = vadd.f32 %v1519_v27, %v564_v47 }
 0x21f   :  { %v584_v56 = vadd.f32 %v1521_v30, %v583_v49  ;;  %v601_v59 = vmul.f32 %v1523_v51, %v599_v29  ;;  %v1525_v62 = vpop.eup %1524  ;;  %vm606_vm0 = vweird.f32 %v1523_v51 }
 0x220   :  { %v569_v61 = vsel %vm568_vm12, %v1519_v27, %v565_v52  ;;  %v609_v27 = vand.u32 2147483647, %v599_v29  ;;  %vm607_vm2 = vmor %vm605_vm1, %vm606_vm0  ;;  %v630_v29 = vld [vmem:[#allocation4 + $0x68] sm:$0xff]  ;;  %v632_v52 = vld [vmem:[#allocation4 + $0x78] sm:$0xff] }
 0x221   :  { %v574_v63 = vsel %vm571_vm14, %v573_v55, %v569_v61  ;;  %v588_v0 = vsel %vm587_vm13, %v1521_v30, %v584_v56  ;;  %v602_v4 = vsub.f32 1.0, %v601_v59 }
 0x222   :  { %v593_v18 = vsel %vm590_vm15, %v592_v60, %v588_v0  ;;  %v616_v22 = vmul.f32 %v1525_v62, %v574_v63  ;;  %vm610_vm3 = vcmp.eq.f32.partialorder %v609_v27, 8.507059e+37 }
 0x223   :  { %v615_v13 = vmul.f32 %v593_v18, %v1911_v10  ;;  %v603_v11 = vmul.f32 %v1523_v51, %v602_v4  ;;  %v629_v10 = vld [vmem:[#allocation4 + $0x60] sm:$0xff] }
 0x225   :  { %v1947_v5 = vadd.f32 %v616_v22, %v615_v13  ;;  %v604_v15 = vadd.f32 %v1523_v51, %v603_v11  ;;  %v631_v11 = vld [vmem:[#allocation4 + $0x70] sm:$0xff] }
 0x227   :  { %1526 = vtanh.f32 %v1947_v5  ;;  %v608_v31 = vsel %vm607_vm2, %v1523_v51, %v604_v15 }
 0x228   :  { %v613_v43 = vsel %vm610_vm3, %v612_v40, %v608_v31 }
 0x22d   :  { %v1527_v30 = vpop.eup %1526 }
 0x22e   :  { %v619_v26 = vmul.f32 %v1527_v30, %v613_v43 }
 0x230   :  { %v627_v23 = vpack.c.bf16 %v619_v26, %v619_v26 }
 0x232   :  { %641 = vmatmul.bf16.vlgmr.msrb.gmra.mxu0 %v627_v23  ;;  %654 = vmatmul.bf16.vlgmr.msrb.gmra.mxu1 %v627_v23 }
 0x233   :  { %667 = vmatmul.bf16.vlgmr.msrb.gmra.mxu2 %v627_v23  ;;  %680 = vmatmul.bf16.vlgmr.msrb.gmra.mxu3 %v627_v23 }
 0x234   :  { %889 = vmatpush.bf16.msrb.mxu0 %v1715_v3  ;;  %902 = vmatpush.bf16.msrb.mxu1 %v1717_v7 }
 0x235   :  { %915 = vmatpush.bf16.msrb.mxu2 %v1730_v21  ;;  %928 = vmatpush.bf16.msrb.mxu3 %v1719_v8 }
 0x238   :  { %890 = vmatpush.bf16.msrb.mxu0 %v1722_v12  ;;  %903 = vmatpush.bf16.msrb.mxu1 %v1726_v16 }
 0x239   :  { %916 = vmatpush.bf16.msrb.mxu2 %v1742_v34  ;;  %929 = vmatpush.bf16.msrb.mxu3 %v1728_v17 }
 0x23c   :  { %891 = vmatpush.bf16.msrb.mxu0 %v1734_v28  ;;  %904 = vmatpush.bf16.msrb.mxu1 %v1738_v32 }
 0x23d   :  { %917 = vmatpush.bf16.msrb.mxu2 %v1748_v42  ;;  %930 = vmatpush.bf16.msrb.mxu3 %v1740_v33 }
 0x240   :  { %892 = vmatpush.bf16.msrb.mxu0 %v1746_v41  ;;  %905 = vmatpush.bf16.msrb.mxu1 %v1752_v45 }
 0x241   :  { %918 = vmatpush.bf16.msrb.mxu2 %v1760_v54  ;;  %931 = vmatpush.bf16.msrb.mxu3 %v1754_v46 }
 0x244   :  { %893 = vmatpush.bf16.msrb.mxu0 %v1758_v53  ;;  %906 = vmatpush.bf16.msrb.mxu1 %v1764_v57 }
 0x245   :  { %919 = vmatpush.bf16.msrb.mxu2 %v1772_v2  ;;  %932 = vmatpush.bf16.msrb.mxu3 %v1766_v58 }
 0x248   :  { %894 = vmatpush.bf16.msrb.mxu0 %v1770_v1  ;;  %907 = vmatpush.bf16.msrb.mxu1 %v1776_v6 }
 0x249   :  { %920 = vmatpush.bf16.msrb.mxu2 %v1784_v20  ;;  %933 = vmatpush.bf16.msrb.mxu3 %v1778_v9 }
 0x24c   :  { %895 = vmatpush.bf16.msrb.mxu0 %v1782_v19  ;;  %908 = vmatpush.bf16.msrb.mxu1 %v1788_v24 }
 0x24d   :  { %921 = vmatpush.bf16.msrb.mxu2 %v1796_v37  ;;  %934 = vmatpush.bf16.msrb.mxu3 %v1790_v25 }
 0x250   :  { %896 = vmatpush.bf16.msrb.mxu0 %v1794_v36  ;;  %909 = vmatpush.bf16.msrb.mxu1 %v1800_v38 }
 0x251   :  { %922 = vmatpush.bf16.msrb.mxu2 %v1808_v44  ;;  %935 = vmatpush.bf16.msrb.mxu3 %v1802_v39 }
 0x2af   :  { %v642_v14 = vpop.f32.mrf.mxu0  ;;  %v655_v47 = vpop.f32.mrf.mxu1 }
 0x2b0   :  { %v643_v48 = vadd.f32 %v642_v14, %v629_v10  ;;  %v656_v49 = vadd.f32 %v655_v47, %v630_v29 }
 0x2b2   :  { %v1425_v50 = vmul.f32 -1.442695, %v643_v48  ;;  %v1426_v51 = vmul.f32 -1.442695, %v656_v49 }
 0x2b4   :  { %1528 = vpow2.f32 %v1425_v50 }
 0x2b5   :  { %1530 = vpow2.f32 %v1426_v51 }
 0x2b6   :  { %v668_v55 = vpop.f32.mrf.mxu2  ;;  %v681_v56 = vpop.f32.mrf.mxu3 }
 0x2b7   :  { %v682_v59 = vadd.f32 %v681_v56, %v632_v52  ;;  %v644_v60 = vpop.f32.mrf.mxu0  ;;  %v657_v61 = vpop.f32.mrf.mxu1  ;;  %v669_v31 = vadd.f32 %v668_v55, %v631_v11 }
 0x2b9   :  { %v1427_v62 = vmul.f32 -1.442695, %v682_v59 }
 0x2ba   :  { %v1529_v63 = vpop.eup %1528 }
 0x2bb   :  { %v1531_v0 = vpop.eup %1530  ;;  %v688_v4 = vadd.f32 1.0, %v1529_v63  ;;  %1532 = vpow2.f32 %v1427_v62 }
 0x2bc   :  { %v707_v18 = vadd.f32 1.0, %v1531_v0 }
 0x2bd   :  { %1534 = vrcp.f32 %v688_v4  ;;  %v700_v10 = vand.u32 2147483648, %v688_v4  ;;  %v698_v47 = vand.u32 2147483647, %v688_v4  ;;  %vm694_vm6 = vweird.f32 %v688_v4 }
 0x2be   :  { %1536 = vrcp.f32 %v707_v18  ;;  %v670_v22 = vpop.f32.mrf.mxu2  ;;  %v683_v13 = vpop.f32.mrf.mxu3  ;;  %v719_v29 = vand.u32 2147483648, %v707_v18  ;;  %v717_v49 = vand.u32 2147483647, %v707_v18  ;;  %vm713_vm7 = vweird.f32 %v707_v18 }
 0x2bf   :  { %v701_v52 = vor.u32 1.1754944e-38, %v700_v10  ;;  %vm699_vm10 = vcmp.eq.f32.partialorder %v698_v47, 8.507059e+37 }
 0x2c0   :  { %v720_v59 = vor.u32 1.1754944e-38, %v719_v29  ;;  %vm718_vm11 = vcmp.eq.f32.partialorder %v717_v49, 8.507059e+37 }
 0x2c1   :  { %v1533_v15 = vpop.eup %1532 }
 0x2c2   :  { %v727_v35 = vadd.f32 1.0, %v1533_v15 }
 0x2c3   :  { %v1535_v27 = vpop.eup %1534 }
 0x2c4   :  { %v1537_v40 = vpop.eup %1536  ;;  %v690_v30 = vmul.f32 %v1535_v27, %v688_v4  ;;  %1538 = vrcp.f32 %v727_v35  ;;  %vm695_vm4 = vweird.f32 %v1535_v27  ;;  %vm733_vm13 = vweird.f32 %v727_v35 }
 0x2c5   :  { %v709_v43 = vmul.f32 %v1537_v40, %v707_v18  ;;  %1540 = vtanh.f32 %v669_v31  ;;  %vm714_vm5 = vweird.f32 %v1537_v40  ;;  %vm696_vm8 = vmor %vm694_vm6, %vm695_vm4  ;;  %v739_v31 = vand.u32 2147483648, %v727_v35 }
 0x2c6   :  { %v691_v26 = vsub.f32 1.0, %v690_v30  ;;  %vm715_vm9 = vmor %vm713_vm7, %vm714_vm5 }
 0x2c7   :  { %v710_v23 = vsub.f32 1.0, %v709_v43  ;;  %v740_v43 = vor.u32 1.1754944e-38, %v739_v31 }
 0x2c8   :  { %v692_v14 = vmul.f32 %v1535_v27, %v691_v26 }
 0x2c9   :  { %v711_v48 = vmul.f32 %v1537_v40, %v710_v23 }
 0x2ca   :  { %v1539_v50 = vpop.eup %1538  ;;  %v693_v51 = vadd.f32 %v1535_v27, %v692_v14 }
 0x2cb   :  { %v712_v55 = vadd.f32 %v1537_v40, %v711_v48  ;;  %v729_v56 = vmul.f32 %v1539_v50, %v727_v35  ;;  %v1541_v61 = vpop.eup %1540  ;;  %vm734_vm12 = vweird.f32 %v1539_v50 }
 0x2cc   :  { %v697_v60 = vsel %vm696_vm8, %v1535_v27, %v693_v51  ;;  %v737_v27 = vand.u32 2147483647, %v727_v35  ;;  %vm735_vm14 = vmor %vm733_vm13, %vm734_vm12  ;;  %v758_v35 = vld [vmem:[#allocation4 + $0x88] sm:$0xff]  ;;  %v760_v51 = vld [vmem:[#allocation4 + $0x98] sm:$0xff] }
 0x2cd   :  { %v702_v62 = vsel %vm699_vm10, %v701_v52, %v697_v60  ;;  %v716_v63 = vsel %vm715_vm9, %v1537_v40, %v712_v55  ;;  %v730_v0 = vsub.f32 1.0, %v729_v56 }
 0x2ce   :  { %v721_v22 = vsel %vm718_vm11, %v720_v59, %v716_v63  ;;  %v744_v13 = vmul.f32 %v1541_v61, %v702_v62  ;;  %vm738_vm15 = vcmp.eq.f32.partialorder %v737_v27, 8.507059e+37 }
 0x2cf   :  { %v743_v11 = vmul.f32 %v721_v22, %v1947_v5  ;;  %v731_v15 = vmul.f32 %v1539_v50, %v730_v0  ;;  %v757_v5 = vld [vmem:[#allocation4 + $0x80] sm:$0xff] }
 0x2d1   :  { %v1983_v4 = vadd.f32 %v744_v13, %v743_v11  ;;  %v732_v18 = vadd.f32 %v1539_v50, %v731_v15  ;;  %v759_v15 = vld [vmem:[#allocation4 + $0x90] sm:$0xff] }
 0x2d3   :  { %1542 = vtanh.f32 %v1983_v4  ;;  %v736_v30 = vsel %vm735_vm14, %v1539_v50, %v732_v18 }
 0x2d4   :  { %v741_v26 = vsel %vm738_vm15, %v740_v43, %v736_v30 }
 0x2d9   :  { %v1543_v40 = vpop.eup %1542 }
 0x2da   :  { %v747_v23 = vmul.f32 %v1543_v40, %v741_v26 }
 0x2dc   :  { %v755_v10 = vpack.c.bf16 %v747_v23, %v747_v23 }
 0x2de   :  { %769 = vmatmul.bf16.vlgmr.msra.gmra.mxu0 %v755_v10  ;;  %782 = vmatmul.bf16.vlgmr.msra.gmra.mxu1 %v755_v10 }
 0x2df   :  { %795 = vmatmul.bf16.vlgmr.msra.gmra.mxu2 %v755_v10  ;;  %808 = vmatmul.bf16.vlgmr.msra.gmra.mxu3 %v755_v10 }
 0x2e0   :  { %1017 = vmatpush.bf16.msra.mxu0 %v1715_v3  ;;  %1030 = vmatpush.bf16.msra.mxu1 %v1717_v7 }
 0x2e1   :  { %1043 = vmatpush.bf16.msra.mxu2 %v1730_v21  ;;  %1056 = vmatpush.bf16.msra.mxu3 %v1719_v8 }
 0x2e4   :  { %1018 = vmatpush.bf16.msra.mxu0 %v1722_v12  ;;  %1031 = vmatpush.bf16.msra.mxu1 %v1726_v16 }
 0x2e5   :  { %1044 = vmatpush.bf16.msra.mxu2 %v1742_v34  ;;  %1057 = vmatpush.bf16.msra.mxu3 %v1728_v17 }
 0x2e8   :  { %1019 = vmatpush.bf16.msra.mxu0 %v1734_v28  ;;  %1032 = vmatpush.bf16.msra.mxu1 %v1738_v32 }
 0x2e9   :  { %1045 = vmatpush.bf16.msra.mxu2 %v1748_v42  ;;  %1058 = vmatpush.bf16.msra.mxu3 %v1740_v33 }
 0x2ec   :  { %1020 = vmatpush.bf16.msra.mxu0 %v1746_v41  ;;  %1033 = vmatpush.bf16.msra.mxu1 %v1752_v45 }
 0x2ed   :  { %1046 = vmatpush.bf16.msra.mxu2 %v1760_v54  ;;  %1059 = vmatpush.bf16.msra.mxu3 %v1754_v46 }
 0x2f0   :  { %1021 = vmatpush.bf16.msra.mxu0 %v1758_v53  ;;  %1034 = vmatpush.bf16.msra.mxu1 %v1764_v57 }
 0x2f1   :  { %1047 = vmatpush.bf16.msra.mxu2 %v1772_v2  ;;  %1060 = vmatpush.bf16.msra.mxu3 %v1766_v58 }
 0x2f4   :  { %1022 = vmatpush.bf16.msra.mxu0 %v1770_v1  ;;  %1035 = vmatpush.bf16.msra.mxu1 %v1776_v6 }
 0x2f5   :  { %1048 = vmatpush.bf16.msra.mxu2 %v1784_v20  ;;  %1061 = vmatpush.bf16.msra.mxu3 %v1778_v9 }
 0x2f8   :  { %1023 = vmatpush.bf16.msra.mxu0 %v1782_v19  ;;  %1036 = vmatpush.bf16.msra.mxu1 %v1788_v24 }
 0x2f9   :  { %1049 = vmatpush.bf16.msra.mxu2 %v1796_v37  ;;  %1062 = vmatpush.bf16.msra.mxu3 %v1790_v25 }
 0x2fc   :  { %1024 = vmatpush.bf16.msra.mxu0 %v1794_v36  ;;  %1037 = vmatpush.bf16.msra.mxu1 %v1800_v38 }
 0x2fd   :  { %1050 = vmatpush.bf16.msra.mxu2 %v1808_v44  ;;  %1063 = vmatpush.bf16.msra.mxu3 %v1802_v39 }
 0x35b   :  { %v770_v29 = vpop.f32.mrf.mxu0  ;;  %v783_v14 = vpop.f32.mrf.mxu1 }
 0x35c   :  { %v771_v47 = vadd.f32 %v770_v29, %v757_v5  ;;  %v784_v48 = vadd.f32 %v783_v14, %v758_v35 }
 0x35e   :  { %v1428_v49 = vmul.f32 -1.442695, %v771_v47  ;;  %v1429_v50 = vmul.f32 -1.442695, %v784_v48 }
 0x360   :  { %1544 = vpow2.f32 %v1428_v49 }
 0x361   :  { %1546 = vpow2.f32 %v1429_v50 }
 0x362   :  { %v796_v52 = vpop.f32.mrf.mxu2  ;;  %v809_v55 = vpop.f32.mrf.mxu3 }
 0x363   :  { %v810_v56 = vadd.f32 %v809_v55, %v760_v51  ;;  %v772_v59 = vpop.f32.mrf.mxu0  ;;  %v785_v60 = vpop.f32.mrf.mxu1  ;;  %v797_v30 = vadd.f32 %v796_v52, %v759_v15 }
 0x365   :  { %v1430_v61 = vmul.f32 -1.442695, %v810_v56 }
 0x366   :  { %v1545_v62 = vpop.eup %1544 }
 0x367   :  { %v1547_v63 = vpop.eup %1546  ;;  %v816_v0 = vadd.f32 1.0, %v1545_v62  ;;  %1548 = vpow2.f32 %v1430_v61 }
 0x368   :  { %v835_v22 = vadd.f32 1.0, %v1547_v63 }
 0x369   :  { %1550 = vrcp.f32 %v816_v0  ;;  %v828_v5 = vand.u32 2147483648, %v816_v0  ;;  %v826_v14 = vand.u32 2147483647, %v816_v0  ;;  %vm822_vm2 = vweird.f32 %v816_v0 }
 0x36a   :  { %1552 = vrcp.f32 %v835_v22  ;;  %v798_v13 = vpop.f32.mrf.mxu2  ;;  %v811_v11 = vpop.f32.mrf.mxu3  ;;  %v847_v35 = vand.u32 2147483648, %v835_v22  ;;  %v845_v48 = vand.u32 2147483647, %v835_v22  ;;  %vm841_vm3 = vweird.f32 %v835_v22 }
 0x36b   :  { %v829_v51 = vor.u32 1.1754944e-38, %v828_v5  ;;  %vm827_vm6 = vcmp.eq.f32.partialorder %v826_v14, 8.507059e+37 }
 0x36c   :  { %v848_v56 = vor.u32 1.1754944e-38, %v847_v35  ;;  %vm846_vm7 = vcmp.eq.f32.partialorder %v845_v48, 8.507059e+37 }
 0x36d   :  { %v1549_v18 = vpop.eup %1548 }
 0x36e   :  { %v855_v31 = vadd.f32 1.0, %v1549_v18 }
 0x36f   :  { %v1551_v27 = vpop.eup %1550 }
 0x370   :  { %v1553_v43 = vpop.eup %1552  ;;  %v818_v40 = vmul.f32 %v1551_v27, %v816_v0  ;;  %1554 = vrcp.f32 %v855_v31  ;;  %vm823_vm0 = vweird.f32 %v1551_v27  ;;  %vm861_vm9 = vweird.f32 %v855_v31 }
 0x371   :  { %v837_v26 = vmul.f32 %v1553_v43, %v835_v22  ;;  %1556 = vtanh.f32 %v797_v30  ;;  %vm842_vm1 = vweird.f32 %v1553_v43  ;;  %vm824_vm4 = vmor %vm822_vm2, %vm823_vm0  ;;  %v867_v30 = vand.u32 2147483648, %v855_v31 }
 0x372   :  { %v819_v23 = vsub.f32 1.0, %v818_v40  ;;  %vm843_vm5 = vmor %vm841_vm3, %vm842_vm1 }
 0x373   :  { %v838_v10 = vsub.f32 1.0, %v837_v26  ;;  %v868_v26 = vor.u32 1.1754944e-38, %v867_v30 }
 0x374   :  { %v820_v29 = vmul.f32 %v1551_v27, %v819_v23 }
 0x375   :  { %v839_v47 = vmul.f32 %v1553_v43, %v838_v10 }
 0x376   :  { %v1555_v49 = vpop.eup %1554  ;;  %v821_v50 = vadd.f32 %v1551_v27, %v820_v29 }
 0x377   :  { %v840_v52 = vadd.f32 %v1553_v43, %v839_v47  ;;  %v857_v55 = vmul.f32 %v1555_v49, %v855_v31  ;;  %v1557_v60 = vpop.eup %1556  ;;  %vm862_vm8 = vweird.f32 %v1555_v49 }
 0x378   :  { %v825_v59 = vsel %vm824_vm4, %v1551_v27, %v821_v50  ;;  %v865_v27 = vand.u32 2147483647, %v855_v31  ;;  %vm863_vm10 = vmor %vm861_vm9, %vm862_vm8 }
 0x379   :  { %v830_v61 = vsel %vm827_vm6, %v829_v51, %v825_v59  ;;  %v844_v62 = vsel %vm843_vm5, %v1553_v43, %v840_v52  ;;  %v858_v63 = vsub.f32 1.0, %v857_v55 }
 0x37a   :  { %v849_v13 = vsel %vm846_vm7, %v848_v56, %v844_v62  ;;  %v872_v11 = vmul.f32 %v1557_v60, %v830_v61  ;;  %vm866_vm11 = vcmp.eq.f32.partialorder %v865_v27, 8.507059e+37 }
 0x37b   :  { %v871_v15 = vmul.f32 %v849_v13, %v1983_v4  ;;  %v859_v18 = vmul.f32 %v1555_v49, %v858_v63 }
 0x37d   :  { %v2019_v0 = vadd.f32 %v872_v11, %v871_v15  ;;  %v860_v22 = vadd.f32 %v1555_v49, %v859_v18 }
 0x37f   :  { %1558 = vtanh.f32 %v2019_v0  ;;  %v864_v40 = vsel %vm863_vm10, %v1555_v49, %v860_v22 }
 0x380   :  { %v869_v23 = vsel %vm866_vm11, %v868_v26, %v864_v40 }
 0x385   :  { %v1559_v43 = vpop.eup %1558 }
 0x386   :  { %v875_v10 = vmul.f32 %v1559_v43, %v869_v23 }
 0x388   :  { %v883_v5 = vpack.c.bf16 %v875_v10, %v875_v10 }
 0x38a   :  { %897 = vmatmul.bf16.vlgmr.msrb.gmra.mxu0 %v883_v5  ;;  %910 = vmatmul.bf16.vlgmr.msrb.gmra.mxu1 %v883_v5 }
 0x38b   :  { %923 = vmatmul.bf16.vlgmr.msrb.gmra.mxu2 %v883_v5  ;;  %936 = vmatmul.bf16.vlgmr.msrb.gmra.mxu3 %v883_v5  ;;  %v1014_v5 = vld [vmem:[#allocation4 + $0xc8] sm:$0xff] }
 0x38c   :  { %1145 = vmatpush.bf16.msrb.mxu0 %v1715_v3  ;;  %1158 = vmatpush.bf16.msrb.mxu1 %v1717_v7  ;;  %v885_v3 = vld [vmem:[#allocation4 + $0xa0] sm:$0xff]  ;;  %v886_v7 = vld [vmem:[#allocation4 + $0xa8] sm:$0xff] }
 0x38d   :  { %1171 = vmatpush.bf16.msrb.mxu2 %v1730_v21  ;;  %1184 = vmatpush.bf16.msrb.mxu3 %v1719_v8 }
 0x390   :  { %1146 = vmatpush.bf16.msrb.mxu0 %v1722_v12  ;;  %1159 = vmatpush.bf16.msrb.mxu1 %v1726_v16 }
 0x391   :  { %1172 = vmatpush.bf16.msrb.mxu2 %v1742_v34  ;;  %1185 = vmatpush.bf16.msrb.mxu3 %v1728_v17 }
 0x394   :  { %1147 = vmatpush.bf16.msrb.mxu0 %v1734_v28  ;;  %1160 = vmatpush.bf16.msrb.mxu1 %v1738_v32  ;;  %v888_v32 = vld [vmem:[#allocation4 + $0xb8] sm:$0xff] }
 0x395   :  { %1173 = vmatpush.bf16.msrb.mxu2 %v1748_v42  ;;  %1186 = vmatpush.bf16.msrb.mxu3 %v1740_v33 }
 0x398   :  { %1148 = vmatpush.bf16.msrb.mxu0 %v1746_v41  ;;  %1161 = vmatpush.bf16.msrb.mxu1 %v1752_v45 }
 0x399   :  { %1174 = vmatpush.bf16.msrb.mxu2 %v1760_v54  ;;  %1187 = vmatpush.bf16.msrb.mxu3 %v1754_v46 }
 0x39c   :  { %1149 = vmatpush.bf16.msrb.mxu0 %v1758_v53  ;;  %1162 = vmatpush.bf16.msrb.mxu1 %v1764_v57 }
 0x39d   :  { %1175 = vmatpush.bf16.msrb.mxu2 %v1772_v2  ;;  %1188 = vmatpush.bf16.msrb.mxu3 %v1766_v58 }
 0x3a0   :  { %1150 = vmatpush.bf16.msrb.mxu0 %v1770_v1  ;;  %1163 = vmatpush.bf16.msrb.mxu1 %v1776_v6  ;;  %v887_v6 = vld [vmem:[#allocation4 + $0xb0] sm:$0xff] }
 0x3a1   :  { %1176 = vmatpush.bf16.msrb.mxu2 %v1784_v20  ;;  %1189 = vmatpush.bf16.msrb.mxu3 %v1778_v9 }
 0x3a4   :  { %1151 = vmatpush.bf16.msrb.mxu0 %v1782_v19  ;;  %1164 = vmatpush.bf16.msrb.mxu1 %v1788_v24 }
 0x3a5   :  { %1177 = vmatpush.bf16.msrb.mxu2 %v1796_v37  ;;  %1190 = vmatpush.bf16.msrb.mxu3 %v1790_v25 }
 0x3a8   :  { %1152 = vmatpush.bf16.msrb.mxu0 %v1794_v36  ;;  %1165 = vmatpush.bf16.msrb.mxu1 %v1800_v38 }
 0x3a9   :  { %1178 = vmatpush.bf16.msrb.mxu2 %v1808_v44  ;;  %1191 = vmatpush.bf16.msrb.mxu3 %v1802_v39 }
 0x407   :  { %v898_v8 = vpop.f32.mrf.mxu0  ;;  %v911_v12 = vpop.f32.mrf.mxu1 }
 0x408   :  { %v899_v16 = vadd.f32 %v898_v8, %v885_v3  ;;  %v912_v17 = vadd.f32 %v911_v12, %v886_v7 }
 0x40a   :  { %v1431_v21 = vmul.f32 -1.442695, %v899_v16  ;;  %v1432_v28 = vmul.f32 -1.442695, %v912_v17 }
 0x40c   :  { %1560 = vpow2.f32 %v1431_v21  ;;  %v1016_v21 = vld [vmem:[#allocation4 + $0xd8] sm:$0xff] }
 0x40d   :  { %1562 = vpow2.f32 %v1432_v28 }
 0x40e   :  { %v924_v33 = vpop.f32.mrf.mxu2  ;;  %v937_v34 = vpop.f32.mrf.mxu3 }
 0x40f   :  { %v938_v41 = vadd.f32 %v937_v34, %v888_v32  ;;  %v900_v42 = vpop.f32.mrf.mxu0  ;;  %v913_v45 = vpop.f32.mrf.mxu1  ;;  %v925_v24 = vadd.f32 %v924_v33, %v887_v6 }
 0x411   :  { %v1433_v46 = vmul.f32 -1.442695, %v938_v41 }
 0x412   :  { %v1561_v53 = vpop.eup %1560 }
 0x413   :  { %v1563_v54 = vpop.eup %1562  ;;  %v944_v57 = vadd.f32 1.0, %v1561_v53  ;;  %1564 = vpow2.f32 %v1433_v46 }
 0x414   :  { %v963_v58 = vadd.f32 1.0, %v1563_v54 }
 0x415   :  { %1566 = vrcp.f32 %v944_v57  ;;  %v956_v44 = vand.u32 2147483648, %v944_v57  ;;  %v954_v35 = vand.u32 2147483647, %v944_v57  ;;  %vm950_vm14 = vweird.f32 %v944_v57 }
 0x416   :  { %1568 = vrcp.f32 %v963_v58  ;;  %v926_v1 = vpop.f32.mrf.mxu2  ;;  %v939_v2 = vpop.f32.mrf.mxu3  ;;  %v975_v4 = vand.u32 2147483648, %v963_v58  ;;  %v973_v14 = vand.u32 2147483647, %v963_v58  ;;  %vm969_vm15 = vweird.f32 %v963_v58 }
 0x417   :  { %v957_v49 = vor.u32 1.1754944e-38, %v956_v44  ;;  %vm955_vm2 = vcmp.eq.f32.partialorder %v954_v35, 8.507059e+37  ;;  %v1015_v1 = vld [vmem:[#allocation4 + $0xd0] sm:$0xff] }
 0x418   :  { %v976_v52 = vor.u32 1.1754944e-38, %v975_v4  ;;  %vm974_vm3 = vcmp.eq.f32.partialorder %v973_v14, 8.507059e+37 }
 0x419   :  { %v1565_v9 = vpop.eup %1564 }
 0x41a   :  { %v983_v19 = vadd.f32 1.0, %v1565_v9 }
 0x41b   :  { %v1567_v20 = vpop.eup %1566 }
 0x41c   :  { %v1569_v25 = vpop.eup %1568  ;;  %v946_v36 = vmul.f32 %v1567_v20, %v944_v57  ;;  %1570 = vrcp.f32 %v983_v19  ;;  %vm951_vm12 = vweird.f32 %v1567_v20  ;;  %v995_v22 = vand.u32 2147483648, %v983_v19 }
 0x41d   :  { %v965_v37 = vmul.f32 %v1569_v25, %v963_v58  ;;  %1572 = vtanh.f32 %v925_v24  ;;  %vm970_vm13 = vweird.f32 %v1569_v25  ;;  %vm952_vm0 = vmor %vm950_vm14, %vm951_vm12  ;;  %vm989_vm5 = vweird.f32 %v983_v19 }
 0x41e   :  { %v947_v38 = vsub.f32 1.0, %v946_v36  ;;  %vm971_vm1 = vmor %vm969_vm15, %vm970_vm13  ;;  %v993_v30 = vand.u32 2147483647, %v983_v19  ;;  %v996_v40 = vor.u32 1.1754944e-38, %v995_v22 }
 0x41f   :  { %v966_v39 = vsub.f32 1.0, %v965_v37 }
 0x420   :  { %v948_v31 = vmul.f32 %v1567_v20, %v947_v38  ;;  %vm994_vm7 = vcmp.eq.f32.partialorder %v993_v30, 8.507059e+37 }
 0x421   :  { %v967_v29 = vmul.f32 %v1569_v25, %v966_v39 }
 0x422   :  { %v1571_v47 = vpop.eup %1570  ;;  %v949_v48 = vadd.f32 %v1567_v20, %v948_v31 }
 0x423   :  { %v968_v50 = vadd.f32 %v1569_v25, %v967_v29  ;;  %v985_v51 = vmul.f32 %v1571_v47, %v983_v19  ;;  %v1573_v56 = vpop.eup %1572  ;;  %vm990_vm4 = vweird.f32 %v1571_v47 }
 0x424   :  { %v953_v55 = vsel %vm952_vm0, %v1567_v20, %v949_v48  ;;  %vm991_vm6 = vmor %vm989_vm5, %vm990_vm4 }
 0x425   :  { %v958_v59 = vsel %vm955_vm2, %v957_v49, %v953_v55  ;;  %v972_v60 = vsel %vm971_vm1, %v1569_v25, %v968_v50  ;;  %v986_v61 = vsub.f32 1.0, %v985_v51 }
 0x426   :  { %v977_v62 = vsel %vm974_vm3, %v976_v52, %v972_v60  ;;  %v1000_v63 = vmul.f32 %v1573_v56, %v958_v59 }
 0x427   :  { %v999_v13 = vmul.f32 %v977_v62, %v2019_v0  ;;  %v987_v11 = vmul.f32 %v1571_v47, %v986_v61  ;;  %v1013_v0 = vld [vmem:[#allocation4 + $0xc0] sm:$0xff] }
 0x429   :  { %v2055_v15 = vadd.f32 %v1000_v63, %v999_v13  ;;  %v988_v18 = vadd.f32 %v1571_v47, %v987_v11 }
 0x42b   :  { %1574 = vtanh.f32 %v2055_v15  ;;  %v992_v27 = vsel %vm991_vm6, %v1571_v47, %v988_v18 }
 0x42c   :  { %v997_v43 = vsel %vm994_vm7, %v996_v40, %v992_v27 }
 0x431   :  { %v1575_v26 = vpop.eup %1574 }
 0x432   :  { %v1003_v23 = vmul.f32 %v1575_v26, %v997_v43 }
 0x434   :  { %v1011_v10 = vpack.c.bf16 %v1003_v23, %v1003_v23 }
 0x436   :  { %1025 = vmatmul.bf16.vlgmr.msra.gmra.mxu0 %v1011_v10  ;;  %1038 = vmatmul.bf16.vlgmr.msra.gmra.mxu1 %v1011_v10 }
 0x437   :  { %1051 = vmatmul.bf16.vlgmr.msra.gmra.mxu2 %v1011_v10  ;;  %1064 = vmatmul.bf16.vlgmr.msra.gmra.mxu3 %v1011_v10  ;;  %v1142_v10 = vld [vmem:[#allocation4 + $0xe8] sm:$0xff] }
 0x4b3   :  { %v1026_v3 = vpop.f32.mrf.mxu0  ;;  %v1039_v7 = vpop.f32.mrf.mxu1 }
 0x4b4   :  { %v1027_v8 = vadd.f32 %v1026_v3, %v1013_v0  ;;  %v1040_v12 = vadd.f32 %v1039_v7, %v1014_v5 }
 0x4b6   :  { %v1434_v16 = vmul.f32 -1.442695, %v1027_v8  ;;  %v1435_v17 = vmul.f32 -1.442695, %v1040_v12 }
 0x4b8   :  { %1576 = vpow2.f32 %v1434_v16  ;;  %v1144_v16 = vld [vmem:[#allocation4 + $0xf8] sm:$0xff] }
 0x4b9   :  { %1578 = vpow2.f32 %v1435_v17 }
 0x4ba   :  { %v1052_v28 = vpop.f32.mrf.mxu2  ;;  %v1065_v32 = vpop.f32.mrf.mxu3 }
 0x4bb   :  { %v1066_v33 = vadd.f32 %v1065_v32, %v1016_v21  ;;  %v1028_v34 = vpop.f32.mrf.mxu0  ;;  %v1041_v41 = vpop.f32.mrf.mxu1  ;;  %v1053_v19 = vadd.f32 %v1052_v28, %v1015_v1 }
 0x4bd   :  { %v1436_v42 = vmul.f32 -1.442695, %v1066_v33 }
 0x4be   :  { %v1577_v45 = vpop.eup %1576 }
 0x4bf   :  { %v1579_v46 = vpop.eup %1578  ;;  %v1072_v53 = vadd.f32 1.0, %v1577_v45  ;;  %1580 = vpow2.f32 %v1436_v42 }
 0x4c0   :  { %v1091_v54 = vadd.f32 1.0, %v1579_v46 }
 0x4c1   :  { %1582 = vrcp.f32 %v1072_v53  ;;  %v1084_v38 = vand.u32 2147483648, %v1072_v53  ;;  %v1082_v4 = vand.u32 2147483647, %v1072_v53  ;;  %vm1078_vm10 = vweird.f32 %v1072_v53 }
 0x4c2   :  { %1584 = vrcp.f32 %v1091_v54  ;;  %v1054_v57 = vpop.f32.mrf.mxu2  ;;  %v1067_v58 = vpop.f32.mrf.mxu3  ;;  %v1103_v39 = vand.u32 2147483648, %v1091_v54  ;;  %v1101_v35 = vand.u32 2147483647, %v1091_v54  ;;  %vm1097_vm11 = vweird.f32 %v1091_v54 }
 0x4c3   :  { %v1085_v47 = vor.u32 1.1754944e-38, %v1084_v38  ;;  %vm1083_vm14 = vcmp.eq.f32.partialorder %v1082_v4, 8.507059e+37  ;;  %v1143_v57 = vld [vmem:[#allocation4 + $0xf0] sm:$0xff] }
 0x4c4   :  { %v1104_v50 = vor.u32 1.1754944e-38, %v1103_v39  ;;  %vm1102_vm15 = vcmp.eq.f32.partialorder %v1101_v35, 8.507059e+37 }
 0x4c5   :  { %v1581_v2 = vpop.eup %1580 }
 0x4c6   :  { %v1111_v6 = vadd.f32 1.0, %v1581_v2 }
 0x4c7   :  { %v1583_v9 = vpop.eup %1582 }
 0x4c8   :  { %v1585_v20 = vpop.eup %1584  ;;  %v1074_v24 = vmul.f32 %v1583_v9, %v1072_v53  ;;  %1586 = vrcp.f32 %v1111_v6  ;;  %vm1079_vm8 = vweird.f32 %v1583_v9  ;;  %v1123_v18 = vand.u32 2147483648, %v1111_v6 }
 0x4c9   :  { %v1093_v25 = vmul.f32 %v1585_v20, %v1091_v54  ;;  %1588 = vtanh.f32 %v1053_v19  ;;  %vm1098_vm9 = vweird.f32 %v1585_v20  ;;  %vm1080_vm12 = vmor %vm1078_vm10, %vm1079_vm8  ;;  %vm1117_vm1 = vweird.f32 %v1111_v6 }
 0x4ca   :  { %v1075_v36 = vsub.f32 1.0, %v1074_v24  ;;  %vm1099_vm13 = vmor %vm1097_vm11, %vm1098_vm9  ;;  %v1121_v22 = vand.u32 2147483647, %v1111_v6  ;;  %v1124_v27 = vor.u32 1.1754944e-38, %v1123_v18 }
 0x4cb   :  { %v1094_v37 = vsub.f32 1.0, %v1093_v25 }
 0x4cc   :  { %v1076_v44 = vmul.f32 %v1583_v9, %v1075_v36  ;;  %vm1122_vm3 = vcmp.eq.f32.partialorder %v1121_v22, 8.507059e+37 }
 0x4cd   :  { %v1095_v31 = vmul.f32 %v1585_v20, %v1094_v37 }
 0x4ce   :  { %v1587_v29 = vpop.eup %1586  ;;  %v1077_v14 = vadd.f32 %v1583_v9, %v1076_v44 }
 0x4cf   :  { %v1096_v48 = vadd.f32 %v1585_v20, %v1095_v31  ;;  %v1113_v49 = vmul.f32 %v1587_v29, %v1111_v6  ;;  %v1589_v52 = vpop.eup %1588  ;;  %vm1118_vm0 = vweird.f32 %v1587_v29 }
 0x4d0   :  { %v1081_v51 = vsel %vm1080_vm12, %v1583_v9, %v1077_v14  ;;  %vm1119_vm2 = vmor %vm1117_vm1, %vm1118_vm0 }
 0x4d1   :  { %v1086_v55 = vsel %vm1083_vm14, %v1085_v47, %v1081_v51  ;;  %v1100_v56 = vsel %vm1099_vm13, %v1585_v20, %v1096_v48  ;;  %v1114_v59 = vsub.f32 1.0, %v1113_v49 }
 0x4d2   :  { %v1105_v60 = vsel %vm1102_vm15, %v1104_v50, %v1100_v56  ;;  %v1128_v61 = vmul.f32 %v1589_v52, %v1086_v55 }
 0x4d3   :  { %v1127_v62 = vmul.f32 %v1105_v60, %v2055_v15  ;;  %v1115_v63 = vmul.f32 %v1587_v29, %v1114_v59  ;;  %v1141_v15 = vld [vmem:[#allocation4 + $0xe0] sm:$0xff] }
 0x4d5   :  { %v2059_v13 = vadd.f32 %v1128_v61, %v1127_v62  ;;  %v1116_v11 = vadd.f32 %v1587_v29, %v1115_v63 }
 0x4d7   :  { %1590 = vtanh.f32 %v2059_v13  ;;  %v1120_v30 = vsel %vm1119_vm2, %v1587_v29, %v1116_v11 }
 0x4d8   :  { %v1125_v26 = vsel %vm1122_vm3, %v1124_v27, %v1120_v30 }
 0x4dd   :  { %v1591_v40 = vpop.eup %1590 }
 0x4de   :  { %v1131_v43 = vmul.f32 %v1591_v40, %v1125_v26 }
 0x4e0   :  { %v1139_v23 = vpack.c.bf16 %v1131_v43, %v1131_v43 }
 0x4e2   :  { %1153 = vmatmul.bf16.vlgmr.msrb.gmra.mxu0 %v1139_v23  ;;  %1166 = vmatmul.bf16.vlgmr.msrb.gmra.mxu1 %v1139_v23 }
 0x4e3   :  { %1179 = vmatmul.bf16.vlgmr.msrb.gmra.mxu2 %v1139_v23  ;;  %1192 = vmatmul.bf16.vlgmr.msrb.gmra.mxu3 %v1139_v23 }
 0x55f   :  { %v1154_v0 = vpop.f32.mrf.mxu0  ;;  %v1167_v5 = vpop.f32.mrf.mxu1 }
 0x560   :  { %v1155_v3 = vadd.f32 %v1154_v0, %v1141_v15  ;;  %v1168_v7 = vadd.f32 %v1167_v5, %v1142_v10 }
 0x562   :  { %v1437_v8 = vmul.f32 -1.442695, %v1155_v3  ;;  %v1438_v12 = vmul.f32 -1.442695, %v1168_v7 }
 0x564   :  { %1592 = vpow2.f32 %v1437_v8 }
 0x565   :  { %1594 = vpow2.f32 %v1438_v12 }
 0x566   :  { %v1180_v17 = vpop.f32.mrf.mxu2  ;;  %v1193_v21 = vpop.f32.mrf.mxu3 }
 0x567   :  { %v1194_v28 = vadd.f32 %v1193_v21, %v1144_v16  ;;  %v1156_v32 = vpop.f32.mrf.mxu0  ;;  %v1169_v33 = vpop.f32.mrf.mxu1  ;;  %v1181_v6 = vadd.f32 %v1180_v17, %v1143_v57 }
 0x569   :  { %v1439_v34 = vmul.f32 -1.442695, %v1194_v28 }
 0x56a   :  { %v1593_v41 = vpop.eup %1592 }
 0x56b   :  { %v1595_v42 = vpop.eup %1594  ;;  %v1200_v45 = vadd.f32 1.0, %v1593_v41  ;;  %1596 = vpow2.f32 %v1439_v34 }
 0x56c   :  { %v1219_v46 = vadd.f32 1.0, %v1595_v42 }
 0x56d   :  { %1598 = vrcp.f32 %v1200_v45  ;;  %v1212_v36 = vand.u32 2147483648, %v1200_v45  ;;  %v1210_v39 = vand.u32 2147483647, %v1200_v45  ;;  %vm1206_vm6 = vweird.f32 %v1200_v45 }
 0x56e   :  { %1600 = vrcp.f32 %v1219_v46  ;;  %v1182_v53 = vpop.f32.mrf.mxu2  ;;  %v1195_v54 = vpop.f32.mrf.mxu3  ;;  %v1231_v37 = vand.u32 2147483648, %v1219_v46  ;;  %v1229_v4 = vand.u32 2147483647, %v1219_v46  ;;  %vm1225_vm7 = vweird.f32 %v1219_v46 }
 0x56f   :  { %v1213_v29 = vor.u32 1.1754944e-38, %v1212_v36  ;;  %vm1211_vm10 = vcmp.eq.f32.partialorder %v1210_v39, 8.507059e+37 }
 0x570   :  { %v1232_v48 = vor.u32 1.1754944e-38, %v1231_v37  ;;  %vm1230_vm11 = vcmp.eq.f32.partialorder %v1229_v4, 8.507059e+37 }
 0x571   :  { %v1597_v58 = vpop.eup %1596 }
 0x572   :  { %v1239_v1 = vadd.f32 1.0, %v1597_v58 }
 0x573   :  { %v1599_v2 = vpop.eup %1598 }
 0x574   :  { %v1601_v9 = vpop.eup %1600  ;;  %v1202_v19 = vmul.f32 %v1599_v2, %v1200_v45  ;;  %1602 = vrcp.f32 %v1239_v1  ;;  %vm1207_vm4 = vweird.f32 %v1599_v2  ;;  %v1251_v11 = vand.u32 2147483648, %v1239_v1 }
 0x575   :  { %v1221_v20 = vmul.f32 %v1601_v9, %v1219_v46  ;;  %1604 = vtanh.f32 %v1181_v6  ;;  %vm1226_vm5 = vweird.f32 %v1601_v9  ;;  %vm1208_vm8 = vmor %vm1206_vm6, %vm1207_vm4  ;;  %vm1245_vm13 = vweird.f32 %v1239_v1 }
 0x576   :  { %v1203_v24 = vsub.f32 1.0, %v1202_v19  ;;  %vm1227_vm9 = vmor %vm1225_vm7, %vm1226_vm5  ;;  %v1249_v18 = vand.u32 2147483647, %v1239_v1  ;;  %v1252_v30 = vor.u32 1.1754944e-38, %v1251_v11 }
 0x577   :  { %v1222_v25 = vsub.f32 1.0, %v1221_v20 }
 0x578   :  { %v1204_v38 = vmul.f32 %v1599_v2, %v1203_v24  ;;  %vm1250_vm15 = vcmp.eq.f32.partialorder %v1249_v18, 8.507059e+37 }
 0x579   :  { %v1223_v44 = vmul.f32 %v1601_v9, %v1222_v25 }
 0x57a   :  { %v1603_v31 = vpop.eup %1602  ;;  %v1205_v35 = vadd.f32 %v1599_v2, %v1204_v38 }
 0x57b   :  { %v1224_v14 = vadd.f32 %v1601_v9, %v1223_v44  ;;  %v1241_v47 = vmul.f32 %v1603_v31, %v1239_v1  ;;  %v1605_v50 = vpop.eup %1604  ;;  %vm1246_vm12 = vweird.f32 %v1603_v31 }
 0x57c   :  { %v1209_v49 = vsel %vm1208_vm8, %v1599_v2, %v1205_v35  ;;  %vm1247_vm14 = vmor %vm1245_vm13, %vm1246_vm12 }
 0x57d   :  { %v1214_v51 = vsel %vm1211_vm10, %v1213_v29, %v1209_v49  ;;  %v1228_v52 = vsel %vm1227_vm9, %v1601_v9, %v1224_v14  ;;  %v1242_v55 = vsub.f32 1.0, %v1241_v47 }
 0x57e   :  { %v1233_v56 = vsel %vm1230_vm11, %v1232_v48, %v1228_v52  ;;  %v1256_v59 = vmul.f32 %v1605_v50, %v1214_v51 }
 0x57f   :  { %v1255_v60 = vmul.f32 %v1233_v56, %v2059_v13  ;;  %v1243_v61 = vmul.f32 %v1603_v31, %v1242_v55 }
 0x581   :  { %v1257_v62 = vadd.f32 %v1256_v59, %v1255_v60  ;;  %v1244_v63 = vadd.f32 %v1603_v31, %v1243_v61 }
 0x583   :  { %1606 = vtanh.f32 %v1257_v62  ;;  %v1248_v22 = vsel %vm1247_vm14, %v1603_v31, %v1244_v63 }
 0x584   :  { %v1253_v13 = vsel %vm1250_vm15, %v1252_v30, %v1248_v22 }
 0x589   :  { %v1607_v27 = vpop.eup %1606 }
 0x58a   :  { %v1259_v40 = vmul.f32 %v1607_v27, %v1253_v13 }
 0x58c   :  { %1269 = vst [vmem:[#allocation9] sm:$0xff] %v1259_v40 }
 0x58d   :  { %1280 = dma.vmem_to_hbm [thread:$0]  %s1276_s1, 128, %s1278_s25, [#allocation6]  }
 0x58e   :  { %1684 = dma.done.wait [#allocation6], 128  }
 0x58f   :  { %1685 = vsyncadd [#allocation6], 4294967168 }
 0x590   :  { %1285 = vsyncpa [#allocation5], 1 }
 0x591   :  { %1286 = vsyncpa [#allocation8], 1 }
 0x592   :  { %1287 = vsyncpa [#allocation6], 1 }

</bundles_post_ra>
